<compile_context>
chip_gen: v5e
topology: v5e:2x2
jax: 0.10.0
libtpu: 0.0.40
codegen_flags: <defaults>
</compile_context>

<pallas_src>
import jax
import jax.numpy as jnp
from jax.experimental import pallas as pl
from jax.experimental.pallas import tpu as pltpu


# ----------------------------------------------------------------------------
# Fused MaskCausalConv kernel (NCW-native, taps formed in-kernel)
# ----------------------------------------------------------------------------
def _make_kernel(k, cin, cout, L, bn):
    def kernel(x_ref, m_ref, w_ref, b_ref, out_ref, msum_ref):
        # x_ref, m_ref : (bn, cin, L + k - 1) bf16  (causally left-padded)
        # w_ref        : (k + 1, cout, cin)  bf16  (k conv taps | 1x1 downsample)
        # b_ref        : (3, cout, 1)        f32   (b_in | b_mask | b_down)
        # out_ref      : (bn, cout, L)       f32
        # msum_ref     : (bn, 1, L)          f32   (unmasked-input count)
        w = w_ref[...]
        b_in = b_ref[0]                      # (cout, 1)
        b_mask = b_ref[1]
        b_down = b_ref[2]

        for b in range(bn):                  # small static unroll (bn <= 8)
            x = x_ref[b]                     # (cin, L + k - 1) bf16
            m = m_ref[b]
            xm = x * m                       # mask is 0/1 -> exact in bf16

            conv = jnp.zeros((cout, L), jnp.float32)
            msum = jnp.zeros((1, L), jnp.float32)
            for j in range(k):               # causal taps via static lane-offset slices
                tap = xm[:, j:j + L]                                   # (cin, L)
                msum = msum + jnp.sum(m[:, j:j + L].astype(jnp.float32),
                                      axis=0, keepdims=True)
                if cin == 1:
                    # degenerate contraction: VPU broadcast outer product
                    conv = conv + w[j].astype(jnp.float32) * tap.astype(jnp.float32)
                else:
                    # MXU matmul, f32 accumulation
                    conv = conv + jnp.dot(w[j], tap,
                                          preferred_element_type=jnp.float32)

            x_cur = x[:, k - 1:k - 1 + L]    # un-shifted raw x for the 1x1 downsample
            if cin == 1:
                res = w[k].astype(jnp.float32) * x_cur.astype(jnp.float32) + b_down
            else:
                res = jnp.dot(w[k], x_cur, preferred_element_type=jnp.float32) + b_down

            out_mask = msum + b_mask                         # (1,L)+(cout,1) -> (cout,L)
            holes = out_mask == 0.0
            denom = jnp.where(holes, 1.0, out_mask)
            pre = conv / denom + b_in                        # exact division (renorm)
            o = jnp.maximum(jnp.where(holes, 0.0, pre), 0.0)  # relu(output)
            res = jnp.where(holes, 0.0, res)
            # TODO(synk): nn.Dropout(p=0.2) treated as identity (eval-mode forward).
            out_ref[b] = jnp.maximum(o + res, 0.0)            # relu(output + res)
            msum_ref[b] = msum

    return kernel


def _pick_bn(N, cin, cout, L, k, target_bytes=2 << 20, max_unroll=8):
    """Batch-tile size: big enough for bandwidth, >=2 grid steps, VMEM-safe."""
    per_b = 2 * cin * (L + k - 1) * 2 + cout * L * 4 + L * 4   # bytes per batch row
    bn = max(1, min(max_unroll, target_bytes // max(per_b, 1)))
    if N >= 2:
        bn = min(bn, (N + 1) // 2)   # keep >= 2 grid tiles so both v7x TCs get work
    return max(1, min(bn, N))


def mask_causal_conv_forward(x, mask, params):
    """x, mask: [N, Cin, L] (NCW as in PyTorch). Returns (output, new_mask): [N, Cout, L]."""
    N, Cin, L = x.shape
    w_in = params['w_in']                                    # [k, Cin, Cout]
    k, _, Cout = w_in.shape
    Lp = L + k - 1

    # ---- tiny glue: causal left-pad fused with the bf16 cast (one XLA pass) ----
    x_p = jnp.pad(x, ((0, 0), (0, 0), (k - 1, 0))).astype(jnp.bfloat16)
    m_p = jnp.pad(mask, ((0, 0), (0, 0), (k - 1, 0))).astype(jnp.bfloat16)

    # packed weights: k conv taps + 1x1 downsample, stored (k+1, Cout, Cin) bf16
    w_all = jnp.concatenate(
        [jnp.swapaxes(w_in, 1, 2),
         jnp.swapaxes(params['w_down'], 0, 1)[None]], axis=0).astype(jnp.bfloat16)
    # all three per-channel biases in one small f32 array
    biases = jnp.stack([params['b_in'], params['b_mask'], params['b_down']],
                       axis=0).astype(jnp.float32)[:, :, None]   # (3, Cout, 1)

    bn = _pick_bn(N, Cin, Cout, L, k)
    n_pad = ((N + bn - 1) // bn) * bn
    if n_pad != N:
        x_p = jnp.pad(x_p, ((0, n_pad - N), (0, 0), (0, 0)))
        m_p = jnp.pad(m_p, ((0, n_pad - N), (0, 0), (0, 0)))

    kernel = _make_kernel(k, Cin, Cout, L, bn)
    out, msum = pl.pallas_call(
        kernel,
        grid=(n_pad // bn,),
        in_specs=[
            pl.BlockSpec((bn, Cin, Lp), lambda i: (i, 0, 0)),
            pl.BlockSpec((bn, Cin, Lp), lambda i: (i, 0, 0)),
            pl.BlockSpec((k + 1, Cout, Cin), lambda i: (0, 0, 0)),
            pl.BlockSpec((3, Cout, 1), lambda i: (0, 0, 0)),
        ],
        out_specs=[
            pl.BlockSpec((bn, Cout, L), lambda i: (i, 0, 0)),
            pl.BlockSpec((bn, 1, L), lambda i: (i, 0, 0)),
        ],
        out_shape=[
            jax.ShapeDtypeStruct((n_pad, Cout, L), jnp.float32),
            jax.ShapeDtypeStruct((n_pad, 1, L), jnp.float32),
        ],
        compiler_params=pltpu.CompilerParams(
            dimension_semantics=("parallel",)),
    )(x_p, m_p, w_all, biases)

    out = out[:N]
    # new_mask derived from the exact f32 mask-count + b_mask -> bit-identical
    # hole detection to the in-kernel one, but at 1/Cout of the kernel writeback.
    out_mask = msum[:N] + params['b_mask'].astype(jnp.float32)[None, :, None]
    new_mask = (out_mask != 0.0).astype(jnp.float32)
    return out, new_mask


# ----------------------------------------------------------------------------
# Pure-JAX reference (mirrors the PyTorch forward, eval mode) for validation
# ----------------------------------------------------------------------------
def mask_causal_conv_ref(x, mask, params):
    w_in = params['w_in']                              # [k, Cin, Cout]
    k = w_in.shape[0]
    _, _, L = x.shape
    xm_p = jnp.pad(x * mask, ((0, 0), (0, 0), (k - 1, 0)))
    m_p = jnp.pad(mask, ((0, 0), (0, 0), (k - 1, 0)))
    conv, msum = 0.0, 0.0
    for j in range(k):
        conv = conv + jnp.einsum('ncl,co->nol', xm_p[:, :, j:j + L], w_in[j])
        msum = msum + m_p[:, :, j:j + L].sum(axis=1, keepdims=True)
    out_mask = msum + params['b_mask'][None, :, None]
    holes = out_mask == 0.0
    mask_sum = jnp.where(holes, 1.0, out_mask)
    output_pre = conv / mask_sum + params['b_in'][None, :, None]
    output = jnp.where(holes, 0.0, output_pre)
    new_mask = jnp.where(holes, 0.0, 1.0)
    output = jax.nn.relu(output)                       # dropout = identity (eval)
    res = jnp.einsum('ncl,co->nol', x, params['w_down']) + params['b_down'][None, :, None]
    res = jnp.where(holes, 0.0, res)
    output = jax.nn.relu(output + res)
    return output, new_mask


# ----------------------------------------------------------------------------
# deterministic synthetic parameters
# ----------------------------------------------------------------------------
def init_params(key, in_dim, out_dim, kernel_size):
    k0, k1, k2, k3, k4 = jax.random.split(key, 5)
    nrm = lambda kk, shape, s: s * jax.random.normal(kk, shape, jnp.float32)
    return dict(
        # input_conv weight stored as [k, Cin, Cout] (== torch weight[Cout, Cin, k] transposed)
        w_in=nrm(k0, (kernel_size, in_dim, out_dim), 0.2),
        b_in=nrm(k1, (out_dim,), 0.05),
        # mask_conv: all-ones frozen weight folds into the count; its (frozen,
        # randomly initialised) bias IS applied, exactly as the PyTorch module does.
        b_mask=nrm(k2, (out_dim,), 0.05),
        w_down=nrm(k3, (in_dim, out_dim), 0.2),        # 1x1 downsample conv
        b_down=nrm(k4, (out_dim,), 0.05),
    )


# ----------------------------------------------------------------------------
if __name__ == "__main__":
    key = jax.random.PRNGKey(0)

    # (batch N, in_dim, out_dim, kernel_size, length L, zero mask_conv bias?)
    configs = [
        (8, 1, 32, 2, 16, False),    # docstring case [N, 1, L]: VPU outer-product path
        (4, 16, 64, 3, 96, False),   # wider case: in-kernel taps + MXU path, 2-tile grid
        (2, 1, 32, 2, 24, True),     # zero mask bias -> exercises the hole/masked path
        (3, 8, 48, 3, 40, False),    # odd batch -> exercises batch-tile padding
    ]
    for cfg_id, (N, Cin, Cout, k, L, zero_bmask) in enumerate(configs):
        key, kx, km, kp = jax.random.split(key, 4)
        x = jax.random.normal(kx, (N, Cin, L), jnp.float32)
        mask = (jax.random.uniform(km, (N, Cin, L)) > 0.3).astype(jnp.float32)
        params = init_params(kp, Cin, Cout, k)
        if zero_bmask:
            params['b_mask'] = jnp.zeros((Cout,), jnp.float32)

        out, new_mask = jax.block_until_ready(
            mask_causal_conv_forward(x, mask, params))
        ref_out, ref_mask = mask_causal_conv_ref(x, mask, params)

        assert out.shape == (N, Cout, L) and new_mask.shape == (N, Cout, L)
        assert bool(jnp.allclose(out, ref_out, rtol=1e-2, atol=1e-2)), \
            f"config {cfg_id}: output mismatch"
        assert bool(jnp.allclose(new_mask, ref_mask, atol=1e-6)), \
            f"config {cfg_id}: new_mask mismatch"

    print("KERNEL_OK")
</pallas_src>

<mosaic_0001>
module attributes {stable_mosaic.version = 11 : i64} {
  func.func @kernel(%arg0: i32, %arg1: memref<4x1x17xbf16, #tpu.memory_space<vmem>>, %arg2: memref<4x1x17xbf16, #tpu.memory_space<vmem>>, %arg3: memref<3x32x1xbf16, #tpu.memory_space<vmem>>, %arg4: memref<3x32x1xf32, #tpu.memory_space<vmem>>, %arg5: memref<4x32x16xf32, #tpu.memory_space<vmem>>, %arg6: memref<4x1x16xf32, #tpu.memory_space<vmem>>) attributes {dimension_semantics = [#tpu.dimension_semantics<parallel>], iteration_bounds = array<i64: 2>, scalar_prefetch = 0 : i64, scratch_operands = 0 : i64, tpu.core_type = #tpu.core_type<tc>, window_params = [{transform_indices = @transform_0, window_bounds = array<i64: 4, 1, 17>}, {transform_indices = @transform_1, window_bounds = array<i64: 4, 1, 17>}, {pipeline_mode = #tpu.pipeline_mode<synchronous>, transform_indices = @transform_2, window_bounds = array<i64: 3, 32, 1>}, {pipeline_mode = #tpu.pipeline_mode<synchronous>, transform_indices = @transform_3, window_bounds = array<i64: 3, 32, 1>}, {transform_indices = @transform_4, window_bounds = array<i64: 4, 32, 16>}, {transform_indices = @transform_5, window_bounds = array<i64: 4, 1, 16>}]} {
    %c0 = arith.constant 0 : index
    %c0_0 = arith.constant 0 : index
    %c0_1 = arith.constant 0 : index
    %0 = vector.load %arg3[%c0, %c0_0, %c0_1] : memref<3x32x1xbf16, #tpu.memory_space<vmem>>, vector<3x32x1xbf16>
    %c0_2 = arith.constant 0 : index
    %c0_3 = arith.constant 0 : index
    %c0_4 = arith.constant 0 : index
    %1 = vector.load %arg4[%c0_2, %c0_3, %c0_4] : memref<3x32x1xf32, #tpu.memory_space<vmem>>, vector<1x32x1xf32>
    %2 = vector.shape_cast %1 : vector<1x32x1xf32> to vector<32x1xf32>
    %c1 = arith.constant 1 : index
    %c0_5 = arith.constant 0 : index
    %c0_6 = arith.constant 0 : index
    %3 = vector.load %arg4[%c1, %c0_5, %c0_6] : memref<3x32x1xf32, #tpu.memory_space<vmem>>, vector<1x32x1xf32>
    %4 = vector.shape_cast %3 : vector<1x32x1xf32> to vector<32x1xf32>
    %c2 = arith.constant 2 : index
    %c0_7 = arith.constant 0 : index
    %c0_8 = arith.constant 0 : index
    %5 = vector.load %arg4[%c2, %c0_7, %c0_8] : memref<3x32x1xf32, #tpu.memory_space<vmem>>, vector<1x32x1xf32>
    %6 = vector.shape_cast %5 : vector<1x32x1xf32> to vector<32x1xf32>
    %c0_9 = arith.constant 0 : index
    %c0_10 = arith.constant 0 : index
    %c0_11 = arith.constant 0 : index
    %7 = vector.load %arg1[%c0_9, %c0_10, %c0_11] : memref<4x1x17xbf16, #tpu.memory_space<vmem>>, vector<1x1x17xbf16>
    %8 = vector.shape_cast %7 : vector<1x1x17xbf16> to vector<1x17xbf16>
    %c0_12 = arith.constant 0 : index
    %c0_13 = arith.constant 0 : index
    %c0_14 = arith.constant 0 : index
    %9 = vector.load %arg2[%c0_12, %c0_13, %c0_14] : memref<4x1x17xbf16, #tpu.memory_space<vmem>>, vector<1x1x17xbf16>
    %10 = vector.shape_cast %9 : vector<1x1x17xbf16> to vector<1x17xbf16>
    %11 = arith.mulf %8, %10 : vector<1x17xbf16>
    %cst = arith.constant 0.000000e+00 : f32
    %12 = vector.broadcast %cst : f32 to vector<32x16xf32>
    %cst_15 = arith.constant 0.000000e+00 : f32
    %13 = vector.broadcast %cst_15 : f32 to vector<1x16xf32>
    %14 = vector.extract_strided_slice %11 {offsets = [0, 0], sizes = [1, 16], strides = [1, 1]} : vector<1x17xbf16> to vector<1x16xbf16>
    %15 = vector.extract_strided_slice %10 {offsets = [0, 0], sizes = [1, 16], strides = [1, 1]} : vector<1x17xbf16> to vector<1x16xbf16>
    %16 = arith.extf %15 : vector<1x16xbf16> to vector<1x16xf32>
    %cst_16 = arith.constant dense<0.000000e+00> : vector<16xf32>
    %17 = vector.multi_reduction <add>, %16, %cst_16 [0] : vector<1x16xf32> to vector<16xf32>
    %18 = vector.shape_cast %17 : vector<16xf32> to vector<1x16xf32>
    %19 = arith.addf %13, %18 : vector<1x16xf32>
    %20 = vector.extract_strided_slice %0 {offsets = [0, 0, 0], sizes = [1, 32, 1], strides = [1, 1, 1]} : vector<3x32x1xbf16> to vector<1x32x1xbf16>
    %21 = vector.shape_cast %20 : vector<1x32x1xbf16> to vector<32x1xbf16>
    %22 = arith.extf %21 : vector<32x1xbf16> to vector<32x1xf32>
    %23 = arith.extf %14 : vector<1x16xbf16> to vector<1x16xf32>
    %24 = vector.broadcast %22 : vector<32x1xf32> to vector<32x16xf32>
    %25 = vector.broadcast %23 : vector<1x16xf32> to vector<32x16xf32>
    %26 = arith.mulf %24, %25 : vector<32x16xf32>
    %27 = arith.addf %12, %26 : vector<32x16xf32>
    %28 = vector.extract_strided_slice %11 {offsets = [0, 1], sizes = [1, 16], strides = [1, 1]} : vector<1x17xbf16> to vector<1x16xbf16>
    %29 = vector.extract_strided_slice %10 {offsets = [0, 1], sizes = [1, 16], strides = [1, 1]} : vector<1x17xbf16> to vector<1x16xbf16>
    %30 = arith.extf %29 : vector<1x16xbf16> to vector<1x16xf32>
    %cst_17 = arith.constant dense<0.000000e+00> : vector<16xf32>
    %31 = vector.multi_reduction <add>, %30, %cst_17 [0] : vector<1x16xf32> to vector<16xf32>
    %32 = vector.shape_cast %31 : vector<16xf32> to vector<1x16xf32>
    %33 = arith.addf %19, %32 : vector<1x16xf32>
    %34 = vector.extract_strided_slice %0 {offsets = [1, 0, 0], sizes = [1, 32, 1], strides = [1, 1, 1]} : vector<3x32x1xbf16> to vector<1x32x1xbf16>
    %35 = vector.shape_cast %34 : vector<1x32x1xbf16> to vector<32x1xbf16>
    %36 = arith.extf %35 : vector<32x1xbf16> to vector<32x1xf32>
    %37 = arith.extf %28 : vector<1x16xbf16> to vector<1x16xf32>
    %38 = vector.broadcast %36 : vector<32x1xf32> to vector<32x16xf32>
    %39 = vector.broadcast %37 : vector<1x16xf32> to vector<32x16xf32>
    %40 = arith.mulf %38, %39 : vector<32x16xf32>
    %41 = arith.addf %27, %40 : vector<32x16xf32>
    %42 = vector.extract_strided_slice %8 {offsets = [0, 1], sizes = [1, 16], strides = [1, 1]} : vector<1x17xbf16> to vector<1x16xbf16>
    %43 = vector.extract_strided_slice %0 {offsets = [2, 0, 0], sizes = [1, 32, 1], strides = [1, 1, 1]} : vector<3x32x1xbf16> to vector<1x32x1xbf16>
    %44 = vector.shape_cast %43 : vector<1x32x1xbf16> to vector<32x1xbf16>
    %45 = arith.extf %44 : vector<32x1xbf16> to vector<32x1xf32>
    %46 = arith.extf %42 : vector<1x16xbf16> to vector<1x16xf32>
    %47 = vector.broadcast %45 : vector<32x1xf32> to vector<32x16xf32>
    %48 = vector.broadcast %46 : vector<1x16xf32> to vector<32x16xf32>
    %49 = arith.mulf %47, %48 : vector<32x16xf32>
    %50 = vector.broadcast %6 : vector<32x1xf32> to vector<32x16xf32>
    %51 = arith.addf %49, %50 : vector<32x16xf32>
    %52 = vector.broadcast %33 : vector<1x16xf32> to vector<32x16xf32>
    %53 = vector.broadcast %4 : vector<32x1xf32> to vector<32x16xf32>
    %54 = arith.addf %52, %53 : vector<32x16xf32>
    %cst_18 = arith.constant 0.000000e+00 : f32
    %55 = vector.broadcast %cst_18 : f32 to vector<32x16xf32>
    %56 = arith.cmpf oeq, %54, %55 : vector<32x16xf32>
    %cst_19 = arith.constant 1.000000e+00 : f32
    %57 = vector.broadcast %cst_19 : f32 to vector<32x16xf32>
    %58 = arith.select %56, %57, %54 : vector<32x16xi1>, vector<32x16xf32>
    %59 = arith.divf %41, %58 : vector<32x16xf32>
    %60 = vector.broadcast %2 : vector<32x1xf32> to vector<32x16xf32>
    %61 = arith.addf %59, %60 : vector<32x16xf32>
    %cst_20 = arith.constant 0.000000e+00 : f32
    %62 = vector.broadcast %cst_20 : f32 to vector<32x16xf32>
    %63 = arith.select %56, %62, %61 : vector<32x16xi1>, vector<32x16xf32>
    %cst_21 = arith.constant 0.000000e+00 : f32
    %64 = vector.broadcast %cst_21 : f32 to vector<32x16xf32>
    %65 = arith.maximumf %63, %64 : vector<32x16xf32>
    %cst_22 = arith.constant 0.000000e+00 : f32
    %66 = vector.broadcast %cst_22 : f32 to vector<32x16xf32>
    %67 = arith.select %56, %66, %51 : vector<32x16xi1>, vector<32x16xf32>
    %68 = arith.addf %65, %67 : vector<32x16xf32>
    %cst_23 = arith.constant 0.000000e+00 : f32
    %69 = vector.broadcast %cst_23 : f32 to vector<32x16xf32>
    %70 = arith.maximumf %68, %69 : vector<32x16xf32>
    %c0_24 = arith.constant 0 : index
    %c0_25 = arith.constant 0 : index
    %c0_26 = arith.constant 0 : index
    %71 = vector.load %arg5[%c0_24, %c0_25, %c0_26] : memref<4x32x16xf32, #tpu.memory_space<vmem>>, vector<1x32x16xf32>
    %72 = vector.shape_cast %71 : vector<1x32x16xf32> to vector<32x16xf32>
    %73 = vector.shape_cast %70 : vector<32x16xf32> to vector<1x32x16xf32>
    tpu.vector_store %arg5[%c0_24, %c0_25, %c0_26], %73 {strides = array<i32>} : memref<4x32x16xf32, #tpu.memory_space<vmem>>, vector<1x32x16xf32>,
    %c0_27 = arith.constant 0 : index
    %c0_28 = arith.constant 0 : index
    %c0_29 = arith.constant 0 : index
    %74 = vector.load %arg6[%c0_27, %c0_28, %c0_29] : memref<4x1x16xf32, #tpu.memory_space<vmem>>, vector<1x1x16xf32>
    %75 = vector.shape_cast %74 : vector<1x1x16xf32> to vector<1x16xf32>
    %76 = vector.shape_cast %33 : vector<1x16xf32> to vector<1x1x16xf32>
    tpu.vector_store %arg6[%c0_27, %c0_28, %c0_29], %76 {strides = array<i32>} : memref<4x1x16xf32, #tpu.memory_space<vmem>>, vector<1x1x16xf32>,
    %c1_30 = arith.constant 1 : index
    %c0_31 = arith.constant 0 : index
    %c0_32 = arith.constant 0 : index
    %77 = vector.load %arg1[%c1_30, %c0_31, %c0_32] : memref<4x1x17xbf16, #tpu.memory_space<vmem>>, vector<1x1x17xbf16>
    %78 = vector.shape_cast %77 : vector<1x1x17xbf16> to vector<1x17xbf16>
    %c1_33 = arith.constant 1 : index
    %c0_34 = arith.constant 0 : index
    %c0_35 = arith.constant 0 : index
    %79 = vector.load %arg2[%c1_33, %c0_34, %c0_35] : memref<4x1x17xbf16, #tpu.memory_space<vmem>>, vector<1x1x17xbf16>
    %80 = vector.shape_cast %79 : vector<1x1x17xbf16> to vector<1x17xbf16>
    %81 = arith.mulf %78, %80 : vector<1x17xbf16>
    %cst_36 = arith.constant 0.000000e+00 : f32
    %82 = vector.broadcast %cst_36 : f32 to vector<32x16xf32>
    %cst_37 = arith.constant 0.000000e+00 : f32
    %83 = vector.broadcast %cst_37 : f32 to vector<1x16xf32>
    %84 = vector.extract_strided_slice %81 {offsets = [0, 0], sizes = [1, 16], strides = [1, 1]} : vector<1x17xbf16> to vector<1x16xbf16>
    %85 = vector.extract_strided_slice %80 {offsets = [0, 0], sizes = [1, 16], strides = [1, 1]} : vector<1x17xbf16> to vector<1x16xbf16>
    %86 = arith.extf %85 : vector<1x16xbf16> to vector<1x16xf32>
    %cst_38 = arith.constant dense<0.000000e+00> : vector<16xf32>
    %87 = vector.multi_reduction <add>, %86, %cst_38 [0] : vector<1x16xf32> to vector<16xf32>
    %88 = vector.shape_cast %87 : vector<16xf32> to vector<1x16xf32>
    %89 = arith.addf %83, %88 : vector<1x16xf32>
    %90 = vector.extract_strided_slice %0 {offsets = [0, 0, 0], sizes = [1, 32, 1], strides = [1, 1, 1]} : vector<3x32x1xbf16> to vector<1x32x1xbf16>
    %91 = vector.shape_cast %90 : vector<1x32x1xbf16> to vector<32x1xbf16>
    %92 = arith.extf %91 : vector<32x1xbf16> to vector<32x1xf32>
    %93 = arith.extf %84 : vector<1x16xbf16> to vector<1x16xf32>
    %94 = vector.broadcast %92 : vector<32x1xf32> to vector<32x16xf32>
    %95 = vector.broadcast %93 : vector<1x16xf32> to vector<32x16xf32>
    %96 = arith.mulf %94, %95 : vector<32x16xf32>
    %97 = arith.addf %82, %96 : vector<32x16xf32>
    %98 = vector.extract_strided_slice %81 {offsets = [0, 1], sizes = [1, 16], strides = [1, 1]} : vector<1x17xbf16> to vector<1x16xbf16>
    %99 = vector.extract_strided_slice %80 {offsets = [0, 1], sizes = [1, 16], strides = [1, 1]} : vector<1x17xbf16> to vector<1x16xbf16>
    %100 = arith.extf %99 : vector<1x16xbf16> to vector<1x16xf32>
    %cst_39 = arith.constant dense<0.000000e+00> : vector<16xf32>
    %101 = vector.multi_reduction <add>, %100, %cst_39 [0] : vector<1x16xf32> to vector<16xf32>
    %102 = vector.shape_cast %101 : vector<16xf32> to vector<1x16xf32>
    %103 = arith.addf %89, %102 : vector<1x16xf32>
    %104 = vector.extract_strided_slice %0 {offsets = [1, 0, 0], sizes = [1, 32, 1], strides = [1, 1, 1]} : vector<3x32x1xbf16> to vector<1x32x1xbf16>
    %105 = vector.shape_cast %104 : vector<1x32x1xbf16> to vector<32x1xbf16>
    %106 = arith.extf %105 : vector<32x1xbf16> to vector<32x1xf32>
    %107 = arith.extf %98 : vector<1x16xbf16> to vector<1x16xf32>
    %108 = vector.broadcast %106 : vector<32x1xf32> to vector<32x16xf32>
    %109 = vector.broadcast %107 : vector<1x16xf32> to vector<32x16xf32>
    %110 = arith.mulf %108, %109 : vector<32x16xf32>
    %111 = arith.addf %97, %110 : vector<32x16xf32>
    %112 = vector.extract_strided_slice %78 {offsets = [0, 1], sizes = [1, 16], strides = [1, 1]} : vector<1x17xbf16> to vector<1x16xbf16>
    %113 = vector.extract_strided_slice %0 {offsets = [2, 0, 0], sizes = [1, 32, 1], strides = [1, 1, 1]} : vector<3x32x1xbf16> to vector<1x32x1xbf16>
    %114 = vector.shape_cast %113 : vector<1x32x1xbf16> to vector<32x1xbf16>
    %115 = arith.extf %114 : vector<32x1xbf16> to vector<32x1xf32>
    %116 = arith.extf %112 : vector<1x16xbf16> to vector<1x16xf32>
    %117 = vector.broadcast %115 : vector<32x1xf32> to vector<32x16xf32>
    %118 = vector.broadcast %116 : vector<1x16xf32> to vector<32x16xf32>
    %119 = arith.mulf %117, %118 : vector<32x16xf32>
    %120 = vector.broadcast %6 : vector<32x1xf32> to vector<32x16xf32>
    %121 = arith.addf %119, %120 : vector<32x16xf32>
    %122 = vector.broadcast %103 : vector<1x16xf32> to vector<32x16xf32>
    %123 = vector.broadcast %4 : vector<32x1xf32> to vector<32x16xf32>
    %124 = arith.addf %122, %123 : vector<32x16xf32>
    %cst_40 = arith.constant 0.000000e+00 : f32
    %125 = vector.broadcast %cst_40 : f32 to vector<32x16xf32>
    %126 = arith.cmpf oeq, %124, %125 : vector<32x16xf32>
    %cst_41 = arith.constant 1.000000e+00 : f32
    %127 = vector.broadcast %cst_41 : f32 to vector<32x16xf32>
    %128 = arith.select %126, %127, %124 : vector<32x16xi1>, vector<32x16xf32>
    %129 = arith.divf %111, %128 : vector<32x16xf32>
    %130 = vector.broadcast %2 : vector<32x1xf32> to vector<32x16xf32>
    %131 = arith.addf %129, %130 : vector<32x16xf32>
    %cst_42 = arith.constant 0.000000e+00 : f32
    %132 = vector.broadcast %cst_42 : f32 to vector<32x16xf32>
    %133 = arith.select %126, %132, %131 : vector<32x16xi1>, vector<32x16xf32>
    %cst_43 = arith.constant 0.000000e+00 : f32
    %134 = vector.broadcast %cst_43 : f32 to vector<32x16xf32>
    %135 = arith.maximumf %133, %134 : vector<32x16xf32>
    %cst_44 = arith.constant 0.000000e+00 : f32
    %136 = vector.broadcast %cst_44 : f32 to vector<32x16xf32>
    %137 = arith.select %126, %136, %121 : vector<32x16xi1>, vector<32x16xf32>
    %138 = arith.addf %135, %137 : vector<32x16xf32>
    %cst_45 = arith.constant 0.000000e+00 : f32
    %139 = vector.broadcast %cst_45 : f32 to vector<32x16xf32>
    %140 = arith.maximumf %138, %139 : vector<32x16xf32>
    %c1_46 = arith.constant 1 : index
    %c0_47 = arith.constant 0 : index
    %c0_48 = arith.constant 0 : index
    %141 = vector.load %arg5[%c1_46, %c0_47, %c0_48] : memref<4x32x16xf32, #tpu.memory_space<vmem>>, vector<1x32x16xf32>
    %142 = vector.shape_cast %141 : vector<1x32x16xf32> to vector<32x16xf32>
    %143 = vector.shape_cast %140 : vector<32x16xf32> to vector<1x32x16xf32>
    tpu.vector_store %arg5[%c1_46, %c0_47, %c0_48], %143 {strides = array<i32>} : memref<4x32x16xf32, #tpu.memory_space<vmem>>, vector<1x32x16xf32>,
    %c1_49 = arith.constant 1 : index
    %c0_50 = arith.constant 0 : index
    %c0_51 = arith.constant 0 : index
    %144 = vector.load %arg6[%c1_49, %c0_50, %c0_51] : memref<4x1x16xf32, #tpu.memory_space<vmem>>, vector<1x1x16xf32>
    %145 = vector.shape_cast %144 : vector<1x1x16xf32> to vector<1x16xf32>
    %146 = vector.shape_cast %103 : vector<1x16xf32> to vector<1x1x16xf32>
    tpu.vector_store %arg6[%c1_49, %c0_50, %c0_51], %146 {strides = array<i32>} : memref<4x1x16xf32, #tpu.memory_space<vmem>>, vector<1x1x16xf32>,
    %c2_52 = arith.constant 2 : index
    %c0_53 = arith.constant 0 : index
    %c0_54 = arith.constant 0 : index
    %147 = vector.load %arg1[%c2_52, %c0_53, %c0_54] : memref<4x1x17xbf16, #tpu.memory_space<vmem>>, vector<1x1x17xbf16>
    %148 = vector.shape_cast %147 : vector<1x1x17xbf16> to vector<1x17xbf16>
    %c2_55 = arith.constant 2 : index
    %c0_56 = arith.constant 0 : index
    %c0_57 = arith.constant 0 : index
    %149 = vector.load %arg2[%c2_55, %c0_56, %c0_57] : memref<4x1x17xbf16, #tpu.memory_space<vmem>>, vector<1x1x17xbf16>
    %150 = vector.shape_cast %149 : vector<1x1x17xbf16> to vector<1x17xbf16>
    %151 = arith.mulf %148, %150 : vector<1x17xbf16>
    %cst_58 = arith.constant 0.000000e+00 : f32
    %152 = vector.broadcast %cst_58 : f32 to vector<32x16xf32>
    %cst_59 = arith.constant 0.000000e+00 : f32
    %153 = vector.broadcast %cst_59 : f32 to vector<1x16xf32>
    %154 = vector.extract_strided_slice %151 {offsets = [0, 0], sizes = [1, 16], strides = [1, 1]} : vector<1x17xbf16> to vector<1x16xbf16>
    %155 = vector.extract_strided_slice %150 {offsets = [0, 0], sizes = [1, 16], strides = [1, 1]} : vector<1x17xbf16> to vector<1x16xbf16>
    %156 = arith.extf %155 : vector<1x16xbf16> to vector<1x16xf32>
    %cst_60 = arith.constant dense<0.000000e+00> : vector<16xf32>
    %157 = vector.multi_reduction <add>, %156, %cst_60 [0] : vector<1x16xf32> to vector<16xf32>
    %158 = vector.shape_cast %157 : vector<16xf32> to vector<1x16xf32>
    %159 = arith.addf %153, %158 : vector<1x16xf32>
    %160 = vector.extract_strided_slice %0 {offsets = [0, 0, 0], sizes = [1, 32, 1], strides = [1, 1, 1]} : vector<3x32x1xbf16> to vector<1x32x1xbf16>
    %161 = vector.shape_cast %160 : vector<1x32x1xbf16> to vector<32x1xbf16>
    %162 = arith.extf %161 : vector<32x1xbf16> to vector<32x1xf32>
    %163 = arith.extf %154 : vector<1x16xbf16> to vector<1x16xf32>
    %164 = vector.broadcast %162 : vector<32x1xf32> to vector<32x16xf32>
    %165 = vector.broadcast %163 : vector<1x16xf32> to vector<32x16xf32>
    %166 = arith.mulf %164, %165 : vector<32x16xf32>
    %167 = arith.addf %152, %166 : vector<32x16xf32>
    %168 = vector.extract_strided_slice %151 {offsets = [0, 1], sizes = [1, 16], strides = [1, 1]} : vector<1x17xbf16> to vector<1x16xbf16>
    %169 = vector.extract_strided_slice %150 {offsets = [0, 1], sizes = [1, 16], strides = [1, 1]} : vector<1x17xbf16> to vector<1x16xbf16>
    %170 = arith.extf %169 : vector<1x16xbf16> to vector<1x16xf32>
    %cst_61 = arith.constant dense<0.000000e+00> : vector<16xf32>
    %171 = vector.multi_reduction <add>, %170, %cst_61 [0] : vector<1x16xf32> to vector<16xf32>
    %172 = vector.shape_cast %171 : vector<16xf32> to vector<1x16xf32>
    %173 = arith.addf %159, %172 : vector<1x16xf32>
    %174 = vector.extract_strided_slice %0 {offsets = [1, 0, 0], sizes = [1, 32, 1], strides = [1, 1, 1]} : vector<3x32x1xbf16> to vector<1x32x1xbf16>
    %175 = vector.shape_cast %174 : vector<1x32x1xbf16> to vector<32x1xbf16>
    %176 = arith.extf %175 : vector<32x1xbf16> to vector<32x1xf32>
    %177 = arith.extf %168 : vector<1x16xbf16> to vector<1x16xf32>
    %178 = vector.broadcast %176 : vector<32x1xf32> to vector<32x16xf32>
    %179 = vector.broadcast %177 : vector<1x16xf32> to vector<32x16xf32>
    %180 = arith.mulf %178, %179 : vector<32x16xf32>
    %181 = arith.addf %167, %180 : vector<32x16xf32>
    %182 = vector.extract_strided_slice %148 {offsets = [0, 1], sizes = [1, 16], strides = [1, 1]} : vector<1x17xbf16> to vector<1x16xbf16>
    %183 = vector.extract_strided_slice %0 {offsets = [2, 0, 0], sizes = [1, 32, 1], strides = [1, 1, 1]} : vector<3x32x1xbf16> to vector<1x32x1xbf16>
    %184 = vector.shape_cast %183 : vector<1x32x1xbf16> to vector<32x1xbf16>
    %185 = arith.extf %184 : vector<32x1xbf16> to vector<32x1xf32>
    %186 = arith.extf %182 : vector<1x16xbf16> to vector<1x16xf32>
    %187 = vector.broadcast %185 : vector<32x1xf32> to vector<32x16xf32>
    %188 = vector.broadcast %186 : vector<1x16xf32> to vector<32x16xf32>
    %189 = arith.mulf %187, %188 : vector<32x16xf32>
    %190 = vector.broadcast %6 : vector<32x1xf32> to vector<32x16xf32>
    %191 = arith.addf %189, %190 : vector<32x16xf32>
    %192 = vector.broadcast %173 : vector<1x16xf32> to vector<32x16xf32>
    %193 = vector.broadcast %4 : vector<32x1xf32> to vector<32x16xf32>
    %194 = arith.addf %192, %193 : vector<32x16xf32>
    %cst_62 = arith.constant 0.000000e+00 : f32
    %195 = vector.broadcast %cst_62 : f32 to vector<32x16xf32>
    %196 = arith.cmpf oeq, %194, %195 : vector<32x16xf32>
    %cst_63 = arith.constant 1.000000e+00 : f32
    %197 = vector.broadcast %cst_63 : f32 to vector<32x16xf32>
    %198 = arith.select %196, %197, %194 : vector<32x16xi1>, vector<32x16xf32>
    %199 = arith.divf %181, %198 : vector<32x16xf32>
    %200 = vector.broadcast %2 : vector<32x1xf32> to vector<32x16xf32>
    %201 = arith.addf %199, %200 : vector<32x16xf32>
    %cst_64 = arith.constant 0.000000e+00 : f32
    %202 = vector.broadcast %cst_64 : f32 to vector<32x16xf32>
    %203 = arith.select %196, %202, %201 : vector<32x16xi1>, vector<32x16xf32>
    %cst_65 = arith.constant 0.000000e+00 : f32
    %204 = vector.broadcast %cst_65 : f32 to vector<32x16xf32>
    %205 = arith.maximumf %203, %204 : vector<32x16xf32>
    %cst_66 = arith.constant 0.000000e+00 : f32
    %206 = vector.broadcast %cst_66 : f32 to vector<32x16xf32>
    %207 = arith.select %196, %206, %191 : vector<32x16xi1>, vector<32x16xf32>
    %208 = arith.addf %205, %207 : vector<32x16xf32>
    %cst_67 = arith.constant 0.000000e+00 : f32
    %209 = vector.broadcast %cst_67 : f32 to vector<32x16xf32>
    %210 = arith.maximumf %208, %209 : vector<32x16xf32>
    %c2_68 = arith.constant 2 : index
    %c0_69 = arith.constant 0 : index
    %c0_70 = arith.constant 0 : index
    %211 = vector.load %arg5[%c2_68, %c0_69, %c0_70] : memref<4x32x16xf32, #tpu.memory_space<vmem>>, vector<1x32x16xf32>
    %212 = vector.shape_cast %211 : vector<1x32x16xf32> to vector<32x16xf32>
    %213 = vector.shape_cast %210 : vector<32x16xf32> to vector<1x32x16xf32>
    tpu.vector_store %arg5[%c2_68, %c0_69, %c0_70], %213 {strides = array<i32>} : memref<4x32x16xf32, #tpu.memory_space<vmem>>, vector<1x32x16xf32>,
    %c2_71 = arith.constant 2 : index
    %c0_72 = arith.constant 0 : index
    %c0_73 = arith.constant 0 : index
    %214 = vector.load %arg6[%c2_71, %c0_72, %c0_73] : memref<4x1x16xf32, #tpu.memory_space<vmem>>, vector<1x1x16xf32>
    %215 = vector.shape_cast %214 : vector<1x1x16xf32> to vector<1x16xf32>
    %216 = vector.shape_cast %173 : vector<1x16xf32> to vector<1x1x16xf32>
    tpu.vector_store %arg6[%c2_71, %c0_72, %c0_73], %216 {strides = array<i32>} : memref<4x1x16xf32, #tpu.memory_space<vmem>>, vector<1x1x16xf32>,
    %c3 = arith.constant 3 : index
    %c0_74 = arith.constant 0 : index
    %c0_75 = arith.constant 0 : index
    %217 = vector.load %arg1[%c3, %c0_74, %c0_75] : memref<4x1x17xbf16, #tpu.memory_space<vmem>>, vector<1x1x17xbf16>
    %218 = vector.shape_cast %217 : vector<1x1x17xbf16> to vector<1x17xbf16>
    %c3_76 = arith.constant 3 : index
    %c0_77 = arith.constant 0 : index
    %c0_78 = arith.constant 0 : index
    %219 = vector.load %arg2[%c3_76, %c0_77, %c0_78] : memref<4x1x17xbf16, #tpu.memory_space<vmem>>, vector<1x1x17xbf16>
    %220 = vector.shape_cast %219 : vector<1x1x17xbf16> to vector<1x17xbf16>
    %221 = arith.mulf %218, %220 : vector<1x17xbf16>
    %cst_79 = arith.constant 0.000000e+00 : f32
    %222 = vector.broadcast %cst_79 : f32 to vector<32x16xf32>
    %cst_80 = arith.constant 0.000000e+00 : f32
    %223 = vector.broadcast %cst_80 : f32 to vector<1x16xf32>
    %224 = vector.extract_strided_slice %221 {offsets = [0, 0], sizes = [1, 16], strides = [1, 1]} : vector<1x17xbf16> to vector<1x16xbf16>
    %225 = vector.extract_strided_slice %220 {offsets = [0, 0], sizes = [1, 16], strides = [1, 1]} : vector<1x17xbf16> to vector<1x16xbf16>
    %226 = arith.extf %225 : vector<1x16xbf16> to vector<1x16xf32>
    %cst_81 = arith.constant dense<0.000000e+00> : vector<16xf32>
    %227 = vector.multi_reduction <add>, %226, %cst_81 [0] : vector<1x16xf32> to vector<16xf32>
    %228 = vector.shape_cast %227 : vector<16xf32> to vector<1x16xf32>
    %229 = arith.addf %223, %228 : vector<1x16xf32>
    %230 = vector.extract_strided_slice %0 {offsets = [0, 0, 0], sizes = [1, 32, 1], strides = [1, 1, 1]} : vector<3x32x1xbf16> to vector<1x32x1xbf16>
    %231 = vector.shape_cast %230 : vector<1x32x1xbf16> to vector<32x1xbf16>
    %232 = arith.extf %231 : vector<32x1xbf16> to vector<32x1xf32>
    %233 = arith.extf %224 : vector<1x16xbf16> to vector<1x16xf32>
    %234 = vector.broadcast %232 : vector<32x1xf32> to vector<32x16xf32>
    %235 = vector.broadcast %233 : vector<1x16xf32> to vector<32x16xf32>
    %236 = arith.mulf %234, %235 : vector<32x16xf32>
    %237 = arith.addf %222, %236 : vector<32x16xf32>
    %238 = vector.extract_strided_slice %221 {offsets = [0, 1], sizes = [1, 16], strides = [1, 1]} : vector<1x17xbf16> to vector<1x16xbf16>
    %239 = vector.extract_strided_slice %220 {offsets = [0, 1], sizes = [1, 16], strides = [1, 1]} : vector<1x17xbf16> to vector<1x16xbf16>
    %240 = arith.extf %239 : vector<1x16xbf16> to vector<1x16xf32>
    %cst_82 = arith.constant dense<0.000000e+00> : vector<16xf32>
    %241 = vector.multi_reduction <add>, %240, %cst_82 [0] : vector<1x16xf32> to vector<16xf32>
    %242 = vector.shape_cast %241 : vector<16xf32> to vector<1x16xf32>
    %243 = arith.addf %229, %242 : vector<1x16xf32>
    %244 = vector.extract_strided_slice %0 {offsets = [1, 0, 0], sizes = [1, 32, 1], strides = [1, 1, 1]} : vector<3x32x1xbf16> to vector<1x32x1xbf16>
    %245 = vector.shape_cast %244 : vector<1x32x1xbf16> to vector<32x1xbf16>
    %246 = arith.extf %245 : vector<32x1xbf16> to vector<32x1xf32>
    %247 = arith.extf %238 : vector<1x16xbf16> to vector<1x16xf32>
    %248 = vector.broadcast %246 : vector<32x1xf32> to vector<32x16xf32>
    %249 = vector.broadcast %247 : vector<1x16xf32> to vector<32x16xf32>
    %250 = arith.mulf %248, %249 : vector<32x16xf32>
    %251 = arith.addf %237, %250 : vector<32x16xf32>
    %252 = vector.extract_strided_slice %218 {offsets = [0, 1], sizes = [1, 16], strides = [1, 1]} : vector<1x17xbf16> to vector<1x16xbf16>
    %253 = vector.extract_strided_slice %0 {offsets = [2, 0, 0], sizes = [1, 32, 1], strides = [1, 1, 1]} : vector<3x32x1xbf16> to vector<1x32x1xbf16>
    %254 = vector.shape_cast %253 : vector<1x32x1xbf16> to vector<32x1xbf16>
    %255 = arith.extf %254 : vector<32x1xbf16> to vector<32x1xf32>
    %256 = arith.extf %252 : vector<1x16xbf16> to vector<1x16xf32>
    %257 = vector.broadcast %255 : vector<32x1xf32> to vector<32x16xf32>
    %258 = vector.broadcast %256 : vector<1x16xf32> to vector<32x16xf32>
    %259 = arith.mulf %257, %258 : vector<32x16xf32>
    %260 = vector.broadcast %6 : vector<32x1xf32> to vector<32x16xf32>
    %261 = arith.addf %259, %260 : vector<32x16xf32>
    %262 = vector.broadcast %243 : vector<1x16xf32> to vector<32x16xf32>
    %263 = vector.broadcast %4 : vector<32x1xf32> to vector<32x16xf32>
    %264 = arith.addf %262, %263 : vector<32x16xf32>
    %cst_83 = arith.constant 0.000000e+00 : f32
    %265 = vector.broadcast %cst_83 : f32 to vector<32x16xf32>
    %266 = arith.cmpf oeq, %264, %265 : vector<32x16xf32>
    %cst_84 = arith.constant 1.000000e+00 : f32
    %267 = vector.broadcast %cst_84 : f32 to vector<32x16xf32>
    %268 = arith.select %266, %267, %264 : vector<32x16xi1>, vector<32x16xf32>
    %269 = arith.divf %251, %268 : vector<32x16xf32>
    %270 = vector.broadcast %2 : vector<32x1xf32> to vector<32x16xf32>
    %271 = arith.addf %269, %270 : vector<32x16xf32>
    %cst_85 = arith.constant 0.000000e+00 : f32
    %272 = vector.broadcast %cst_85 : f32 to vector<32x16xf32>
    %273 = arith.select %266, %272, %271 : vector<32x16xi1>, vector<32x16xf32>
    %cst_86 = arith.constant 0.000000e+00 : f32
    %274 = vector.broadcast %cst_86 : f32 to vector<32x16xf32>
    %275 = arith.maximumf %273, %274 : vector<32x16xf32>
    %cst_87 = arith.constant 0.000000e+00 : f32
    %276 = vector.broadcast %cst_87 : f32 to vector<32x16xf32>
    %277 = arith.select %266, %276, %261 : vector<32x16xi1>, vector<32x16xf32>
    %278 = arith.addf %275, %277 : vector<32x16xf32>
    %cst_88 = arith.constant 0.000000e+00 : f32
    %279 = vector.broadcast %cst_88 : f32 to vector<32x16xf32>
    %280 = arith.maximumf %278, %279 : vector<32x16xf32>
    %c3_89 = arith.constant 3 : index
    %c0_90 = arith.constant 0 : index
    %c0_91 = arith.constant 0 : index
    %281 = vector.load %arg5[%c3_89, %c0_90, %c0_91] : memref<4x32x16xf32, #tpu.memory_space<vmem>>, vector<1x32x16xf32>
    %282 = vector.shape_cast %281 : vector<1x32x16xf32> to vector<32x16xf32>
    %283 = vector.shape_cast %280 : vector<32x16xf32> to vector<1x32x16xf32>
    tpu.vector_store %arg5[%c3_89, %c0_90, %c0_91], %283 {strides = array<i32>} : memref<4x32x16xf32, #tpu.memory_space<vmem>>, vector<1x32x16xf32>,
    %c3_92 = arith.constant 3 : index
    %c0_93 = arith.constant 0 : index
    %c0_94 = arith.constant 0 : index
    %284 = vector.load %arg6[%c3_92, %c0_93, %c0_94] : memref<4x1x16xf32, #tpu.memory_space<vmem>>, vector<1x1x16xf32>
    %285 = vector.shape_cast %284 : vector<1x1x16xf32> to vector<1x16xf32>
    %286 = vector.shape_cast %243 : vector<1x16xf32> to vector<1x1x16xf32>
    tpu.vector_store %arg6[%c3_92, %c0_93, %c0_94], %286 {strides = array<i32>} : memref<4x1x16xf32, #tpu.memory_space<vmem>>, vector<1x1x16xf32>,
    return
  }
  func.func @transform_0(%arg0: i32) -> (i32, i32, i32) {
    %c0_i32 = arith.constant 0 : i32
    %c0_i32_0 = arith.constant 0 : i32
    %c0_i32_1 = arith.constant 0 : i32
    return %arg0, %c0_i32, %c0_i32_0 : i32, i32, i32
  }
  func.func @transform_1(%arg0: i32) -> (i32, i32, i32) {
    %c0_i32 = arith.constant 0 : i32
    %c0_i32_0 = arith.constant 0 : i32
    %c0_i32_1 = arith.constant 0 : i32
    return %arg0, %c0_i32, %c0_i32_0 : i32, i32, i32
  }
  func.func @transform_2(%arg0: i32) -> (i32, i32, i32) {
    %c0_i32 = arith.constant 0 : i32
    %c0_i32_0 = arith.constant 0 : i32
    %c0_i32_1 = arith.constant 0 : i32
    %c0_i32_2 = arith.constant 0 : i32
    return %c0_i32, %c0_i32_0, %c0_i32_1 : i32, i32, i32
  }
  func.func @transform_3(%arg0: i32) -> (i32, i32, i32) {
    %c0_i32 = arith.constant 0 : i32
    %c0_i32_0 = arith.constant 0 : i32
    %c0_i32_1 = arith.constant 0 : i32
    %c0_i32_2 = arith.constant 0 : i32
    return %c0_i32, %c0_i32_0, %c0_i32_1 : i32, i32, i32
  }
  func.func @transform_4(%arg0: i32) -> (i32, i32, i32) {
    %c0_i32 = arith.constant 0 : i32
    %c0_i32_0 = arith.constant 0 : i32
    %c0_i32_1 = arith.constant 0 : i32
    return %arg0, %c0_i32, %c0_i32_0 : i32, i32, i32
  }
  func.func @transform_5(%arg0: i32) -> (i32, i32, i32) {
    %c0_i32 = arith.constant 0 : i32
    %c0_i32_0 = arith.constant 0 : i32
    %c0_i32_1 = arith.constant 0 : i32
    return %arg0, %c0_i32, %c0_i32_0 : i32, i32, i32
  }
}

</mosaic_0001>

<bundles_post_ra>
// kernel: tpu_custom_call.1
= control target key start
LH: loop header
LB: loop body
LE: loop exit
PB: predicated region body
PF: predicated region fallthrough
CT: control target
= control target key end

     0   :  { %11 = vsyncpa [#allocation3], 0  ;;  %s2606_s0 = inlined_call_operand.vmem [shape: bf16[8,1,17], index: 0, kind: input, shape index: {}]   ;;  %s2607_s1 = inlined_call_operand.vmem [shape: bf16[8,1,17], index: 1, kind: input, shape index: {}]   ;;  %s2608_s2 = inlined_call_operand.vmem [shape: bf16[3,32,1], index: 2, kind: input, shape index: {}]   ;;  %s2609_s3 = inlined_call_operand.vmem [shape: f32[3,32,1], index: 3, kind: input, shape index: {}]   ;;  %s2610_s4 = inlined_call_operand.vmem [shape: f32[8,32,16], index: 4, kind: output, shape index: {0}]   ;;  %s2611_s5 = inlined_call_operand.hbm [shape: f32[8,1,16], index: 5, kind: output, shape index: {1}]  }
   0x1   :  { %13 = vsyncpa [#allocation3 + $0x1], 0  ;;  %s1534_s18 = smov 0   ;;  %s1536_s19 = smov 0  }
   0x2   :  { %s1538_s20 = smov 0   ;;  %s1540_s21 = smov 0  }
   0x3 LB: > { %s1244_s22 = sadd.s32 4294967295, %s1498_s21   ;;  %s1245_s23 = sadd.s32 4294967294, %s1498_s21   ;;  %s1498_s21 = sphi %s1540_s21, %s2716_s21   ;;  %s1494_s20 = sphi %s1538_s20, %s2715_s20   ;;  %s1490_s19 = sphi %s1536_s19, %s2714_s19   ;;  %s1486_s18 = sphi %s1534_s18, %s2713_s18  }
   0x4   : > { %s1557_s24 = sadd.s32 1, %s1498_s21   ;;  %s146_s25 = sadd.s32 1, %s1494_s20 }
   0x5   : > { %s143_s26 = ssub.s32 %s1498_s21, %s1557_s24  ;;  %p156_p0 = scmp.ne.s32.totalorder %s1494_s20, %s1490_s19 }
   0x6   : > { %p144_p1 = scmp.eq.s32.totalorder %s143_s26, 0  ;;  %p157_p2 = scmp.eq.s32.totalorder %s1244_s22, 1 }
   0x7   : > { %p162_p3 = scmp.ne.s32.totalorder %s1490_s19, %s1486_s18  ;;  %p163_p4 = scmp.eq.s32.totalorder %s1245_s23, 1 }
   0x8   : > { %s1567_s27 = scalar_select %p144_p1, %s1494_s20, %s146_s25  }
   0x9   : > { %p1569_p5 = por %p157_p2, %p156_p0  ;;  %p1573_p6 = por %p163_p4, %p162_p3 }
   0xa   : > { %p1248_p7 = scmp.ge.s32.totalorder %s1498_s21, 1  ;;  %p203_p8 = scmp.lt.s32.totalorder %s1498_s21, 3 }
   0xc   : > { %p204_p9 = pnand %p1248_p7, %p203_p8 }
   0xe   : > { %207 = sbr.rel (%p204_p9) target bundleno = 344 (0x158), region = 36 }
  0x13   : > { %v1315_v0 = vld [vmem:[%s2608_s2 + $0x18] sm:$0xff]   ;;  %v1314_v1 = vld [vmem:[%s2608_s2 + $0x10] sm:$0xff]   ;;  %v1290_v2 = vld [vmem:[%s2608_s2] sm:$0xff]   ;;  %s1588_s11 = sshll.u32 %s1244_s22, 2  ;;  %v1500_v3 = vmov 0   ;;  %s1501_s7 = smov 127  }
  0x14   : > { %1378 = vset.pattern.permute.xlu2 %v1500_v3  ;;  %1372 = vset.pattern.permute.xlu1 %v1500_v3  ;;  %v1303_v4 = vunpack.c.l.bf16 %v1315_v0  ;;  %v1304_v5 = vunpack.c.h.bf16 %v1315_v0  ;;  %v1299_v6 = vunpack.c.l.bf16 %v1314_v1  ;;  %v1300_v7 = vunpack.c.h.bf16 %v1314_v1  ;;  %p241_p10 = scmp.lt.s32.totalorder %s1588_s11, 7  ;;  %v1313_v12 = vld [vmem:[%s2608_s2 + $0x8] sm:$0xff]   ;;  %v1259_v22 = vld [vmem:[%s2609_s3 + $0x40] sm:$0xff]  ;;  %v1262_v31 = vld [vmem:[%s2609_s3 + $0x58] sm:$0xff]  ;;  %s1147_s12 = scalar_lea.hbm %s2611_s5, %s1588_s11 }
  0x15   : > { %1361 = vset.pattern.permute.xlu0 %v1500_v3  ;;  %v1291_v8 = vunpack.c.l.bf16 %v1290_v2  ;;  %v1292_v9 = vunpack.c.h.bf16 %v1290_v2  ;;  %v1295_v14 = vunpack.c.l.bf16 %v1313_v12  ;;  %v1296_v15 = vunpack.c.h.bf16 %v1313_v12  ;;  %v1317_v23 = vld [vmem:[%s2608_s2 + $0x28] sm:$0xff]   ;;  %v1316_v24 = vld [vmem:[%s2608_s2 + $0x20] sm:$0xff]   ;;  %v1261_v32 = vld [vmem:[%s2609_s3 + $0x50] sm:$0xff]  ;;  %s1970_s15 = sshll.u32 %s1147_s12, 4  ;;  %s1456_s26 = scalar_lea.hbm %s2611_s5, 8  ;;  %s1151_s15 = int_to_ptr.hbm [resolvable:$true] %s1970_s15 }
  0x16   : > { %v1379_v10 = vpack.i.bf16 %v1304_v5, %v1303_v4  ;;  %v1373_v11 = vpack.i.bf16 %v1300_v7, %v1299_v6  ;;  %s1595_s14 = scalar_select %p241_p10, %s1588_s11, 7  ;;  %v1311_v25 = vunpack.c.l.bf16 %v1317_v23  ;;  %v1312_v26 = vunpack.c.h.bf16 %v1317_v23  ;;  %v1257_v33 = vld [vmem:[%s2609_s3 + $0x30] sm:$0xff]  ;;  %v1260_v34 = vld [vmem:[%s2609_s3 + $0x48] sm:$0xff]  ;;  %v1255_v37 = vld [vmem:[%s2609_s3 + $0x20] sm:$0xff] }
  0x17   : > { %v1362_v13 = vpack.i.bf16 %v1292_v9, %v1291_v8  ;;  %v1367_v21 = vpack.i.bf16 %v1296_v15, %v1295_v14  ;;  %v1307_v27 = vunpack.c.l.bf16 %v1316_v24  ;;  %v1308_v28 = vunpack.c.h.bf16 %v1316_v24  ;;  %v1256_v35 = vld [vmem:[%s2609_s3 + $0x28] sm:$0xff]  ;;  %v270_v38 = vld [vmem:[%s2609_s3] sm:$0xff]  ;;  %v1258_v39 = vld [vmem:[%s2609_s3 + $0x38] sm:$0xff]  ;;  %s1450_s16 = sshra.s32 %s1151_s15, 4  ;;  %s1451_s16 = int_to_ptr.hbm [resolvable:$true] %s1450_s16 }
  0x18   : > { %1380 = vperm.xlu2 %1378, %v1379_v10   ;;  %1374 = vperm.xlu1 %1372, %v1373_v11   ;;  %s1601_s17 = scalar_lea.vmem %s2607_s1, %s1595_s14  ;;  %v1394_v29 = vpack.i.bf16 %v1312_v26, %v1311_v25  ;;  %v271_v36 = vld [vmem:[%s2609_s3 + $0x8] sm:$0xff]  ;;  %v273_v40 = vld [vmem:[%s2609_s3 + $0x18] sm:$0xff]  ;;  %v272_v43 = vld [vmem:[%s2609_s3 + $0x10] sm:$0xff]  ;;  %s243_s30 = scalar_lea.vmem %s2606_s0, %s1595_s14  ;;  %vm590_vm0 = vcmask 122880  }
  0x19   : > { %1363 = vperm.xlu0 %1361, %v1362_v13   ;;  %v285_v16 = vld [vmem:[%s1601_s17] sm:$0x1]  ;;  %v1264_v17 = vld [vmem:[%s1601_s17 + $0x1] sm:$0x1]  ;;  %v1384_v30 = vpack.i.bf16 %v1308_v28, %v1307_v27  ;;  %v1271_v41 = vld [vmem:[%s1601_s17 + $0x2] sm:$0x1]  ;;  %p1457_p0 = scmp.lt.s32.totalorder %s1451_s16, %s2611_s5 }
  0x1a   : > { %v1605_v18 = vunpack.c.l.bf16 %v285_v16  ;;  %v1607_v19 = vunpack.c.l.bf16 %v1264_v17  ;;  %v1278_v42 = vld [vmem:[%s1601_s17 + $0x3] sm:$0x1]  ;;  %v1656_v44 = vunpack.c.l.bf16 %v1271_v41  ;;  %v1667_v47 = vld [vmem:[%s243_s30] sm:$0x1]  ;;  %v1670_v49 = vld [vmem:[%s243_s30 + $0x1] sm:$0x1] }
  0x1b   : > { %v1658_v45 = vunpack.c.l.bf16 %v1278_v42  ;;  %v286_v48 = vunpack.c.l.bf16 %v1667_v47  ;;  %v596_v51 = vunpack.c.l.bf16 %v1670_v49  ;;  %v1679_v54 = vld [vmem:[%s243_s30 + $0x3] sm:$0x1]  ;;  %v1681_v55 = vld [vmem:[%s243_s30 + $0x2] sm:$0x1]  ;;  %s237_s17 = sand.u32 1, %s1490_s19   ;;  %s1452_s22 = scalar_lea.hbm %s1451_s16, 4 }
  0x1c   : > { %v1389_v20 = vpack.i.bf16 %v1607_v19, %v1605_v18  ;;  %v952_v57 = vunpack.c.l.bf16 %v1679_v54  ;;  %v774_v59 = vunpack.c.l.bf16 %v1681_v55  ;;  %s1249_s6 = sshll.u32 %s237_s17, 2  ;;  %s1133_s11 = scalar_lea.sflag [#allocation3], %s237_s17 }
  0x1d   : > { %v1399_v46 = vpack.i.bf16 %v1658_v45, %v1656_v44  ;;  %v288_v50 = vmul.f32 %v1605_v18, %v286_v48  ;;  %v598_v53 = vmul.f32 %v1607_v19, %v596_v51  ;;  %s1742_s8 = scalar_lea.vmem [#allocation2], %s1249_s6  ;;  %p1453_p11 = scmp.ne.s32.totalorder %s1451_s16, %s1452_s22 }
  0x1e   : > { %v954_v61 = vmul.f32 %v1658_v45, %v952_v57  ;;  %v776_v0 = vmul.f32 %v1656_v44, %v774_v59  ;;  %s1148_s13 = sshll.u32 %s1742_s8, 4  ;;  %p1458_p1 = scmp.lt.s32.totalorder %s1456_s26, %s1452_s22  ;;  %s1968_s13 = int_to_ptr.vmem [resolvable:$true] %s1148_s13 }
  0x1f   : > { %v289_v52 = vpack.c.bf16 %v288_v50, %v288_v50  ;;  %v599_v58 = vpack.c.bf16 %v598_v53, %v598_v53  ;;  %p1454_p12 = pnand %p1453_p11, %p1569_p5 }
  0x20   : > { %1390 = vrot.lane.b32.xlu1 %v1389_v20, %s1501_s7  ;;  %410 = vperm.xlu2 %1378, %v1259_v22   ;;  %v955_v3 = vpack.c.bf16 %v954_v61, %v954_v61  ;;  %v777_v5 = vpack.c.bf16 %v776_v0, %v776_v0  ;;  %p1459_p2 = por %p1458_p1, %p1457_p0 }
  0x21   : > { %1368 = vperm.xlu0 %1361, %v1367_v21   ;;  %v296_v56 = vunpack.c.l.bf16 %v289_v52  ;;  %v602_v63 = vunpack.c.l.bf16 %v599_v58  ;;  %v1761_v58 = vperm.slane %v952_v57, 0  ;;  %p1455_p13 = pneg %p1454_p12 }
  0x22   : > { %v958_v7 = vunpack.c.l.bf16 %v955_v3  ;;  %v780_v8 = vunpack.c.l.bf16 %v777_v5 }
  0x23   : > { %v317_v60 = vperm.slane %v296_v56, 0  ;;  %v603_v4 = vperm.slane %v602_v63, 0  ;;  %v1757_v56 = vperm.slane %v286_v48, 0  ;;  %v1771_v48 = vperm.slane %v596_v51, 0  ;;  %p1460_p3 = pnand %p1459_p2, %p1455_p13 }
  0x24   : > { %v1695_v10 = vperm.slane %v958_v7, 0  ;;  %v1697_v11 = vperm.slane %v780_v8, 0 }
  0x28   : > { %1395 = vperm.xlu1 %1372, %v1394_v29   ;;  %425 = vperm.xlu2 %1378, %v1262_v31  }
  0x29   : > { %1385 = vperm.xlu0 %1361, %v1384_v30  }
  0x30   : > { %420 = vperm.xlu1 %1372, %v1261_v32   ;;  %445 = vperm.xlu2 %1378, %v1257_v33  }
  0x31   : > { %415 = vperm.xlu0 %1361, %v1260_v34  }
  0x38   : > { %440 = vperm.xlu1 %1372, %v1256_v35   ;;  %532 = vperm.xlu2 %1378, %v271_v36  }
  0x39   : > { %435 = vperm.xlu0 %1361, %v1255_v37  }
  0x40   : > { %527 = vperm.xlu1 %1372, %v270_v38  }
  0x41   : > { %450 = vperm.xlu0 %1361, %v1258_v39  }
  0x48   : > { %542 = vperm.xlu1 %1372, %v273_v40  }
  0x49   : > { %537 = vperm.xlu0 %1361, %v272_v43  }
  0x50   : > { %1400 = vrot.lane.b32.xlu1 %v1399_v46, %s1501_s7 }
  0x72   : > { %v1381_v62 = vpop.permute.xlu2 %1380 }
  0x73   : > { %v1382_v1 = vunpack.i.l.bf16 %v1381_v62  ;;  %v1691_v6 = vunpack.i.h.bf16 %v1381_v62 }
  0x75   : > { %v357_v2 = vmul.f32 %v1382_v1, %v317_v60  ;;  %v620_v9 = vmul.f32 %v1691_v6, %v603_v4  ;;  %v1701_v12 = vmul.f32 %v1382_v1, %v1695_v10  ;;  %v797_v13 = vmul.f32 %v1382_v1, %v1697_v11 }
  0x76   : > { %v358_v37 = vmul.f32 %v1691_v6, %v317_v60  ;;  %v619_v52 = vmul.f32 %v1382_v1, %v603_v4 }
  0x77   : > { %367 = vrot.lane.b32.xlu1 %v357_v2, %s1501_s7 }
  0x7a   : > { %v1777_v1 = vpop.permute.xlu2 %410 }
  0x7f   : > { %631 = vrot.lane.b32.xlu1 %v620_v9, %s1501_s7 }
  0x87   : > { %807 = vrot.lane.b32.xlu1 %v797_v13, %s1501_s7 }
  0x8a   : > { %v1375_v14 = vpop.permute.xlu1 %1374 }
  0x8b   : > { %v1377_v15 = vunpack.i.h.bf16 %v1375_v14  ;;  %v1705_v16 = vunpack.i.l.bf16 %v1375_v14  ;;  %v1364_v17 = vpop.permute.xlu0 %1363 }
  0x8c   : > { %v1366_v20 = vunpack.i.h.bf16 %v1364_v17  ;;  %v1365_v21 = vunpack.i.l.bf16 %v1364_v17 }
  0x8d   : > { %v974_v22 = vmul.f32 %v1377_v15, %v1695_v10  ;;  %v356_v23 = vmul.f32 %v1377_v15, %v317_v60  ;;  %v355_v24 = vmul.f32 %v1705_v16, %v317_v60  ;;  %v617_v40 = vmul.f32 %v1705_v16, %v603_v4 }
  0x8e   : > { %v1712_v25 = vmul.f32 %v1365_v21, %v317_v60  ;;  %v1714_v26 = vmul.f32 %v1366_v20, %v603_v4  ;;  %v1717_v27 = vmul.f32 %v1366_v20, %v1695_v10  ;;  %v1722_v29 = vmul.f32 %v1366_v20, %v317_v60 }
  0x8f   : > { %983 = vrot.lane.b32.xlu1 %v974_v22, %s1501_s7  ;;  %365 = vrot.lane.b32.xlu0 %v356_v23, %s1501_s7  ;;  %v1725_v30 = vmul.f32 %v1365_v21, %v1697_v11  ;;  %v1727_v31 = vmul.f32 %v1365_v21, %v603_v4  ;;  %v796_v47 = vmul.f32 %v1377_v15, %v1697_v11  ;;  %v1819_v23 = vpop.permute.xlu2 %425 }
  0x90   : > { %363 = vrot.lane.b32.xlu2 %v355_v24, %s1501_s7  ;;  %v795_v57 = vmul.f32 %v1705_v16, %v1697_v11  ;;  %v1784_v3 = vmul.f32 %v1366_v20, %v1697_v11  ;;  %v1788_v49 = vmul.f32 %v1365_v21, %v1695_v10  ;;  %v973_v20 = vmul.f32 %v1705_v16, %v1695_v10 }
  0x91   : > { %2631 = vst [vmem:[#allocation5_spill] sm:$0xff] %v1727_v31  ;;  %v798_v21 = vmul.f32 %v1691_v6, %v1697_v11  ;;  %v1829_v16 = vperm.slane %v774_v59, 0 }
  0x92   : > { %v1391_v28 = vpop.permute.xlu1 %1390  ;;  %2635 = vst [vmem:[#allocation9_spill] sm:$0xff] %v1784_v3 }
  0x93   : > { %v1369_v32 = vpop.permute.xlu0 %1368  ;;  %v1393_v33 = vunpack.i.h.bf16 %v1391_v28  ;;  %v1392_v34 = vunpack.i.l.bf16 %v1391_v28  ;;  %2636 = vst [vmem:[#allocation10_spill] sm:$0xff] %v1788_v49 }
  0x94   : > { %v1371_v35 = vunpack.i.h.bf16 %v1369_v32  ;;  %v1370_v36 = vunpack.i.l.bf16 %v1369_v32 }
  0x95   : > { %v616_v38 = vadd.f32 %v1393_v33, %v1607_v19  ;;  %v330_v39 = vadd.f32 %v1392_v34, %v1605_v18 }
  0x96   : > { %v1733_v41 = vmul.f32 %v1370_v36, %v317_v60  ;;  %v1735_v42 = vmul.f32 %v1371_v35, %v603_v4  ;;  %v1737_v43 = vmul.f32 %v1371_v35, %v317_v60  ;;  %v1740_v46 = vmul.f32 %v1370_v36, %v1697_v11 }
  0x97   : > { %591 = vst.msk [vmem:[%s1742_s8] sm:$0x1] %vm590_vm0, %v330_v39  ;;  %625 = vrot.lane.b32.xlu0 %v617_v40, %s1501_s7  ;;  %v1748_v18 = vmul.f32 %v1371_v35, %v1697_v11  ;;  %v1750_v19 = vmul.f32 %v1370_v36, %v603_v4  ;;  %v618_v60 = vmul.f32 %v1377_v15, %v603_v4  ;;  %v1793_v4 = vperm.slane %v616_v38, 0 }
  0x98   : > { %1269 = vst.msk [vmem:[%s1742_s8 + $0x1] sm:$0x1] %vm590_vm0, %v616_v38  ;;  %369 = vrot.lane.b32.xlu2 %v358_v37, %s1501_s7  ;;  %v1781_v2 = vmul.f32 %v1370_v36, %v1695_v10  ;;  %v1791_v51 = vmul.f32 %v1371_v35, %v1695_v10  ;;  %v1795_v5 = vperm.slane %v330_v39, 0  ;;  %v976_v11 = vmul.f32 %v1691_v6, %v1695_v10  ;;  %v446_v39 = vpop.permute.xlu2 %445 }
  0x99   : > { %2632 = vst [vmem:[#allocation6_spill] sm:$0xff] %v1748_v18 }
  0x9a   : > { %2633 = vst [vmem:[#allocation7_spill] sm:$0xff] %v1750_v19  ;;  %v1396_v50 = vpop.permute.xlu1 %1395  ;;  %v1840_v55 = vadd.f32 %v446_v39, %v1795_v5 }
  0x9b   : > { %v1397_v53 = vunpack.i.l.bf16 %v1396_v50  ;;  %2634 = vst [vmem:[#allocation8_spill] sm:$0xff] %v1781_v2  ;;  %v1386_v8 = vpop.permute.xlu0 %1385  ;;  %v1800_v13 = vunpack.i.h.bf16 %v1396_v50 }
  0x9c   : > { %2637 = vst [vmem:[#allocation11_spill] sm:$0xff] %v1791_v51  ;;  %v1388_v33 = vunpack.i.h.bf16 %v1386_v8  ;;  %v1387_v34 = vunpack.i.l.bf16 %v1386_v8  ;;  %vm459_vm1 = vcmp.eq.f32.partialorder %v1840_v55, 0.0 }
  0x9d   : > { %v406_v61 = vmul.f32 %v1397_v53, %v1757_v56  ;;  %v1000_v62 = vmul.f32 %v1397_v53, %v1761_v58  ;;  %v644_v7 = vmul.f32 %v1397_v53, %v1771_v48  ;;  %v645_v22 = vmul.f32 %v1800_v13, %v1771_v48 }
  0x9e   : > { %v822_v35 = vmul.f32 %v1397_v53, %v1829_v16  ;;  %v405_v36 = vmul.f32 %v1388_v33, %v1757_v56  ;;  %v404_v38 = vmul.f32 %v1387_v34, %v1757_v56  ;;  %v999_v40 = vmul.f32 %v1388_v33, %v1761_v58 }
  0x9f   : > { %629 = vrot.lane.b32.xlu0 %v619_v52, %s1501_s7  ;;  %v649_v28 = vadd.f32 %v645_v22, %v1819_v23  ;;  %v643_v50 = vmul.f32 %v1388_v33, %v1771_v48  ;;  %v407_v53 = vmul.f32 %v1800_v13, %v1757_v56 }
  0xa0   : > { %627 = vrot.lane.b32.xlu2 %v618_v60, %s1501_s7 }
  0xa1   : > { %v431_v56 = vadd.f32 %v1819_v23, %v407_v53 }
  0xa2   : > { %v421_v63 = vpop.permute.xlu1 %420 }
  0xa3   : > { %v430_v0 = vadd.f32 %v421_v63, %v406_v61  ;;  %v1773_v54 = vadd.f32 %v1000_v62, %v421_v63  ;;  %v648_v17 = vadd.f32 %v644_v7, %v421_v63  ;;  %v416_v32 = vpop.permute.xlu0 %415  ;;  %v826_v6 = vadd.f32 %v822_v35, %v421_v63 }
  0xa4   : > { %v429_v59 = vadd.f32 %v416_v32, %v405_v36  ;;  %v1003_v62 = vadd.f32 %v999_v40, %v416_v32  ;;  %v1856_v63 = vsel %vm459_vm1, 1.0, %v1840_v55  ;;  %v642_v35 = vmul.f32 %v1387_v34, %v1771_v48 }
  0xa5   : > { %565 = vrot.lane.b32.xlu1 %v430_v0, %s1501_s7  ;;  %1404 = vrcp.f32 %v1856_v63  ;;  %v820_v40 = vmul.f32 %v1387_v34, %v1829_v16 }
  0xa6   : > { %v646_v48 = vadd.f32 %v642_v35, %v1777_v1 }
  0xa7   : > { %805 = vrot.lane.b32.xlu0 %v796_v47, %s1501_s7 }
  0xa8   : > { %803 = vrot.lane.b32.xlu2 %v795_v57, %s1501_s7  ;;  %v647_v57 = vadd.f32 %v643_v50, %v416_v32 }
  0xaa   : > { %v1798_v9 = vpop.permute.xlu1 %440 }
  0xab   : > { %v1804_v14 = vadd.f32 %v1798_v9, %v1795_v5  ;;  %v1808_v15 = vadd.f32 %v1793_v4, %v1798_v9  ;;  %v1843_v10 = vpop.permute.xlu0 %435  ;;  %v1899_v36 = vpop.eup %1404 }
  0xac   : > { %v1863_v7 = vadd.f32 %v1843_v10, %v1795_v5  ;;  %v1936_v53 = vadd.f32 %v1793_v4, %v1843_v10  ;;  %vm501_vm10 = vweird.f32 %v1899_v36 }
  0xad   : > { %743 = vrot.lane.b32.xlu1 %v648_v17, %s1501_s7  ;;  %vm2626_vm6 = vcmp.eq.f32.partialorder %v1808_v15, 0.0  ;;  %vm2625_vm7 = vcmp.eq.f32.partialorder %v1804_v14, 0.0 }
  0xae   : > { %2638 = vst [vmem:[#allocation12_spill] sm:$0xff] %v1863_v7  ;;  %vm2628_vm2 = vcmp.eq.f32.partialorder %v1863_v7, 0.0  ;;  %vm2622_vm8 = vcmp.eq.f32.partialorder %v1936_v53, 0.0 }
  0xaf   : > { %981 = vrot.lane.b32.xlu0 %v973_v20, %s1501_s7  ;;  %2642 = vst [vmem:[#allocation16_spill] sm:$0xff] %v1936_v53 }
  0xb0   : > { %809 = vrot.lane.b32.xlu2 %v798_v21, %s1501_s7 }
  0xb2   : > { %v1821_v24 = vpop.permute.xlu1 %527 }
  0xb5   : > { %745 = vrot.lane.b32.xlu1 %v649_v28, %s1501_s7 }
  0xb7   : > { %987 = vrot.lane.b32.xlu0 %v976_v11, %s1501_s7 }
  0xb8   : > { %985 = vrot.lane.b32.xlu2 %v1701_v12, %s1501_s7  ;;  %v428_v12 = vadd.f32 %v1777_v1, %v404_v38 }
  0xba   : > { %v1836_v37 = vpop.permute.xlu1 %542 }
  0xbd   : > { %921 = vrot.lane.b32.xlu1 %v826_v6, %s1501_s7  ;;  %v1908_v6 = vsel %vm2628_vm2, 1.0, %v1863_v7 }
  0xbe   : > { %1406 = vrcp.f32 %v1908_v6 }
  0xbf   : > { %563 = vrot.lane.b32.xlu0 %v429_v59, %s1501_s7 }
  0xc0   : > { %561 = vrot.lane.b32.xlu2 %v428_v12, %s1501_s7 }
  0xc2   : > { %v1401_v52 = vpop.permute.xlu1 %1400 }
  0xc3   : > { %v1403_v60 = vunpack.i.h.bf16 %v1401_v52  ;;  %v1402_v61 = vunpack.i.l.bf16 %v1401_v52 }
  0xc5   : > { %v972_v0 = vadd.f32 %v1403_v60, %v1658_v45  ;;  %v794_v47 = vadd.f32 %v1402_v61, %v1656_v44  ;;  %1097 = vrot.lane.b32.xlu1 %v1003_v62, %s1501_s7  ;;  %v1872_v45 = vpop.permute.xlu0 %450  ;;  %v821_v44 = vmul.f32 %v1388_v33, %v1829_v16  ;;  %v1948_v62 = vpop.eup %1406 }
  0xc6   : > { %v1897_v33 = vadd.f32 %v1872_v45, %v1795_v5  ;;  %v1903_v38 = vadd.f32 %v1793_v4, %v1872_v45  ;;  %v496_v5 = vmul.f32 %v1899_v36, %v1856_v63 }
  0xc7   : > { %v1006_v8 = vperm.slane %v972_v0, 0  ;;  %v1867_v17 = vperm.slane %v794_v47, 0  ;;  %1276 = vst.msk [vmem:[%s1742_s8 + $0x2] sm:$0x1] %vm590_vm0, %v794_v47  ;;  %741 = vrot.lane.b32.xlu0 %v647_v57, %s1501_s7  ;;  %v825_v59 = vadd.f32 %v821_v44, %v416_v32  ;;  %v998_v32 = vmul.f32 %v1387_v34, %v1761_v58 }
  0xc8   : > { %1283 = vst.msk [vmem:[%s1742_s8 + $0x3] sm:$0x1] %vm590_vm0, %v972_v0  ;;  %567 = vrot.lane.b32.xlu2 %v431_v56, %s1501_s7  ;;  %vm460_vm3 = vcmp.eq.f32.partialorder %v1897_v33, 0.0  ;;  %vm658_vm4 = vcmp.eq.f32.partialorder %v1903_v38, 0.0  ;;  %v497_v52 = vsub.f32 1.0, %v496_v5  ;;  %v1977_v47 = vsel %vm2626_vm6, 1.0, %v1808_v15 }
  0xc9   : > { %v1879_v20 = vadd.f32 %v1006_v8, %v1843_v10  ;;  %v1882_v21 = vadd.f32 %v1006_v8, %v1798_v9  ;;  %v1884_v22 = vadd.f32 %v1006_v8, %v446_v39  ;;  %v1887_v28 = vadd.f32 %v1006_v8, %v1872_v45 }
  0xca   : > { %v1892_v11 = vadd.f32 %v1867_v17, %v1798_v9  ;;  %v1911_v9 = vadd.f32 %v1793_v4, %v446_v39  ;;  %v1925_v12 = vsel %vm460_vm3, 1.0, %v1897_v33  ;;  %v1932_v50 = vsel %vm658_vm4, 1.0, %v1903_v38 }
  0xcb   : > { %2639 = vst [vmem:[#allocation13_spill] sm:$0xff] %v1882_v21  ;;  %1408 = vrcp.f32 %v1925_v12  ;;  %v1940_v60 = vadd.f32 %v1867_v17, %v446_v39  ;;  %v1002_v34 = vadd.f32 %v998_v32, %v1777_v1  ;;  %v824_v4 = vadd.f32 %v820_v40, %v1777_v1 }
  0xcc   : > { %2640 = vst [vmem:[#allocation14_spill] sm:$0xff] %v1887_v28  ;;  %vm2621_vm5 = vcmp.eq.f32.partialorder %v1911_v9, 0.0  ;;  %1410 = vrcp.f32 %v1932_v50  ;;  %v1001_v39 = vmul.f32 %v1800_v13, %v1761_v58  ;;  %v498_v0 = vmul.f32 %v1899_v36, %v497_v52 }
  0xcd   : > { %2641 = vst [vmem:[#allocation15_spill] sm:$0xff] %v1911_v9  ;;  %v1946_v61 = vsel %vm2621_vm5, 1.0, %v1911_v9  ;;  %v823_v1 = vmul.f32 %v1800_v13, %v1829_v16  ;;  %v466_v58 = vmul.f32 %v1948_v62, %v1908_v6  ;;  %vm835_vm9 = vcmp.eq.f32.partialorder %v1940_v60, 0.0 }
  0xce   : > { %1412 = vrcp.f32 %v1946_v61  ;;  %v1984_v13 = vsel %vm2625_vm7, 1.0, %v1804_v14  ;;  %v1991_v57 = vsel %vm2622_vm8, 1.0, %v1936_v53  ;;  %v1005_v56 = vadd.f32 %v1001_v39, %v1819_v23 }
  0xcf   : > { %919 = vrot.lane.b32.xlu0 %v825_v59, %s1501_s7  ;;  %v499_v8 = vadd.f32 %v1899_v36, %v498_v0 }
  0xd0   : > { %739 = vrot.lane.b32.xlu2 %v646_v48, %s1501_s7 }
  0xd1   : > { %v1986_v16 = vpop.eup %1408 }
  0xd7   : > { %1095 = vrot.lane.b32.xlu0 %v1002_v34, %s1501_s7 }
  0xd8   : > { %917 = vrot.lane.b32.xlu2 %v824_v4, %s1501_s7 }
  0xd9   : > { %1463 = shalt.err (!%p1460_p3)
}
  0xda   : > { %s1502_s17 = smov 16   ;;  %s1503_s8 = smov 1   ;;  %v2009_v44 = vpop.eup %1410  ;;  %1414 = vrcp.f32 %v1977_v47  ;;  %v827_v35 = vadd.f32 %v823_v1, %v1819_v23  ;;  %v506_v59 = vand.u32 2147483648, %v1856_v63  ;;  %v2017_v48 = vsel %vm835_vm9, 1.0, %v1940_v60  ;;  %v2056_v52 = vpop.permute.xlu2 %532  ;;  %v2702_v55 = vld [vmem:[#allocation9_spill] sm:$0xff] }
  0xdb   : > { %1318 = dma.vmem_to_hbm [thread:$0]  (%p1569_p5), %s1968_s13, 64, %s1151_s15, %s1133_s11, %s1502_s17, %s1502_s17, %s1503_s8   ;;  %1416 = vrcp.f32 %v1984_v13  ;;  %vm500_vm11 = vweird.f32 %v1856_v63  ;;  %v504_v5 = vand.u32 2147483647, %v1856_v63  ;;  %v467_v32 = vsub.f32 1.0, %v466_v58  ;;  %v2022_v40 = vpop.eup %1412 }
  0xdc   : > { %1418 = vrcp.f32 %v1991_v57  ;;  %v2027_v23 = vadd.f32 %v1867_v17, %v1843_v10  ;;  %vm2031_vm12 = vmor %vm500_vm11, %vm501_vm10  ;;  %v474_v34 = vand.u32 2147483647, %v1908_v6  ;;  %v476_v4 = vand.u32 2147483648, %v1908_v6  ;;  %s1288_s28 = sshll.u32 %s1595_s14, 5 }
  0xdd   : > { %v511_v63 = vmul.f32 %v1986_v16, %v1925_v12  ;;  %v709_v39 = vmul.f32 %v2009_v44, %v1932_v50  ;;  %v503_v10 = vsel %vm2031_vm12, %v1899_v36, %v499_v8  ;;  %1420 = vrcp.f32 %v2017_v48  ;;  %s2483_s9 = scalar_lea.vmem %s2610_s4, %s1288_s28 }
  0xde   : > { %2643 = vst [vmem:[#allocation17_spill] sm:$0xff] %v2027_v23  ;;  %v507_v0 = vor.u32 1.1754944e-38, %v506_v59  ;;  %v689_v1 = vand.u32 2147483648, %v1977_v47  ;;  %vm505_vm13 = vcmp.eq.f32.partialorder %v504_v5, 8.507059e+37  ;;  %v468_v58 = vmul.f32 %v1948_v62, %v467_v32 }
  0xdf   : > { %1101 = vrot.lane.b32.xlu0 %v1005_v56, %s1501_s7  ;;  %vm2624_vm14 = vcmp.eq.f32.partialorder %v1882_v21, 0.0  ;;  %v2052_v51 = vmul.f32 %v2022_v40, %v1946_v61  ;;  %vm470_vm15 = vweird.f32 %v1908_v6  ;;  %vm2623_vm0 = vcmp.eq.f32.partialorder %v2027_v23, 0.0 }
  0xe0   : > { %923 = vrot.lane.b32.xlu2 %v827_v35, %s1501_s7  ;;  %v2054_v56 = vpop.eup %1414  ;;  %v508_v36 = vsel %vm505_vm13, %v507_v0, %v503_v10  ;;  %vm2063_vm10 = vcmp.eq.f32.partialorder %v474_v34, 8.507059e+37  ;;  %v477_v5 = vor.u32 1.1754944e-38, %v476_v4  ;;  %v710_v32 = vsub.f32 1.0, %v709_v39 }
  0xe1   : > { %v2061_v35 = vpop.eup %1416  ;;  %v512_v49 = vsub.f32 1.0, %v511_v63  ;;  %v2070_v10 = vor.u32 1.1754944e-38, %v689_v1  ;;  %v2075_v0 = vsel %vm2624_vm14, 1.0, %v1882_v21  ;;  %v679_v4 = vmul.f32 %v2054_v56, %v1977_v47 }
  0xe2   : > { %v2068_v9 = vpop.eup %1418  ;;  %v469_v63 = vadd.f32 %v1948_v62, %v468_v58  ;;  %vm471_vm11 = vweird.f32 %v1948_v62  ;;  %v2088_v39 = vsel %vm2623_vm0, 1.0, %v2027_v23  ;;  %v481_v1 = vmul.f32 %v2061_v35, %v1984_v13 }
  0xe3   : > { %v2079_v2 = vpop.eup %1420  ;;  %v2094_v34 = vadd.f32 %v1867_v17, %v1872_v45  ;;  %v717_v3 = vand.u32 2147483647, %v1932_v50  ;;  %v2100_v58 = vmul.f32 %v2068_v9, %v1991_v57  ;;  %v711_v19 = vmul.f32 %v2009_v44, %v710_v32  ;;  %vm2109_vm12 = vmor %vm470_vm15, %vm471_vm11 }
  0xe4   : > { %v513_v53 = vmul.f32 %v1986_v16, %v512_v49  ;;  %1422 = vrcp.f32 %v2075_v0  ;;  %vm713_vm13 = vweird.f32 %v1932_v50  ;;  %v719_v45 = vand.u32 2147483648, %v1932_v50 }
  0xe5   : > { %v872_v32 = vmul.f32 %v2079_v2, %v2017_v48  ;;  %1424 = vrcp.f32 %v2088_v39  ;;  %v519_v6 = vand.u32 2147483647, %v1925_v12  ;;  %v521_v8 = vand.u32 2147483648, %v1925_v12 }
  0xe6   : > { %v680_v18 = vsub.f32 1.0, %v679_v4  ;;  %vm2124_vm15 = vcmp.eq.f32.partialorder %v717_v3, 8.507059e+37  ;;  %vm516_vm11 = vweird.f32 %v1986_v16  ;;  %v482_v21 = vsub.f32 1.0, %v481_v1 }
  0xe7   : > { %vm486_vm5 = vweird.f32 %v2061_v35  ;;  %vm836_vm8 = vcmp.eq.f32.partialorder %v2094_v34, 0.0  ;;  %vm515_vm0 = vweird.f32 %v1925_v12  ;;  %v873_v17 = vsub.f32 1.0, %v872_v32 }
  0xe8   : > { %1099 = vrot.lane.b32.xlu2 %v1773_v54, %s1501_s7  ;;  %v473_v54 = vsel %vm2109_vm12, %v1948_v62, %v469_v63  ;;  %v712_v63 = vadd.f32 %v2009_v44, %v711_v19  ;;  %vm714_vm12 = vweird.f32 %v2009_v44  ;;  %vm485_vm14 = vweird.f32 %v1984_v13  ;;  %vm2145_vm7 = vmor %vm515_vm0, %vm516_vm11 }
  0xe9   : > { %v368_v49 = vpop.permute.xlu1 %367  ;;  %v478_v3 = vsel %vm2063_vm10, %v477_v5, %v473_v54  ;;  %vm683_vm6 = vweird.f32 %v1977_v47  ;;  %vm684_vm10 = vweird.f32 %v2054_v56  ;;  %vm2163_vm0 = vmor %vm713_vm13, %vm714_vm12  ;;  %vm2167_vm11 = vcmp.eq.f32.partialorder %v519_v6, 8.507059e+37 }
  0xea   : > { %v377_v31 = vadd.f32 %v368_v49, %v1733_v41  ;;  %v364_v23 = vpop.permute.xlu2 %363  ;;  %v514_v41 = vadd.f32 %v1986_v16, %v513_v53  ;;  %v2139_v1 = vpop.eup %1422  ;;  %v681_v5 = vmul.f32 %v2054_v56, %v680_v18  ;;  %v716_v54 = vsel %vm2163_vm0, %v2009_v44, %v712_v63 }
  0xeb   : > { %v375_v62 = vadd.f32 %v364_v23, %v1712_v25  ;;  %v2141_v49 = vpop.permute.xlu0 %537  ;;  %v720_v23 = vor.u32 1.1754944e-38, %v719_v45  ;;  %v2156_v12 = vpop.eup %1424  ;;  %v483_v45 = vmul.f32 %v2061_v35, %v482_v21  ;;  %v874_v6 = vmul.f32 %v2079_v2, %v873_v17 }
  0xec   : > { %v509_v4 = vmul.f32 %v508_v36, %v377_v31  ;;  %v2154_v31 = vsel %vm836_vm8, 1.0, %v2094_v34  ;;  %v518_v50 = vsel %vm2145_vm7, %v1986_v16, %v514_v41  ;;  %v2661_v16 = vand.u32 2147483648, %v1984_v13 }
  0xed   : > { %v479_v25 = vmul.f32 %v478_v3, %v375_v62  ;;  %v522_v62 = vor.u32 1.1754944e-38, %v521_v8  ;;  %1426 = vrcp.f32 %v2154_v31  ;;  %v2658_v3 = vand.u32 2147483647, %v1977_v47 }
  0xee   : > { %v547_v53 = vadd.f32 %v2141_v49, %v509_v4  ;;  %v1035_v4 = vmul.f32 %v2139_v1, %v2075_v0  ;;  %v492_v8 = vor.u32 1.1754944e-38, %v2661_v16  ;;  %v842_v63 = vmul.f32 %v2156_v12, %v2088_v39 }
  0xef   : > { %v545_v32 = vadd.f32 %v1821_v24, %v479_v25  ;;  %vm2190_vm13 = vcmp.eq.f32.partialorder %v2658_v3, 8.507059e+37  ;;  %v665_v41 = vsub.f32 1.0, %v2100_v58  ;;  %v484_v36 = vadd.f32 %v2061_v35, %v483_v45 }
  0xf0   : > { %v2186_v18 = vsel %vm459_vm1, 0.0, %v547_v53  ;;  %v682_v53 = vadd.f32 %v2054_v56, %v681_v5  ;;  %v2662_v3 = vand.u32 2147483647, %v1984_v13  ;;  %vm1013_vm12 = vcmp.eq.f32.partialorder %v1884_v22, 0.0 }
  0xf1   : > { %v632_v21 = vpop.permute.xlu1 %631  ;;  %v2201_v17 = vsel %vm2628_vm2, 0.0, %v545_v32  ;;  %v721_v58 = vsel %vm2124_vm15, %v720_v23, %v716_v54  ;;  %v523_v32 = vsel %vm2167_vm11, %v522_v62, %v518_v50  ;;  %v882_v5 = vand.u32 2147483648, %v2017_v48  ;;  %vm2225_vm2 = vmor %vm485_vm14, %vm486_vm5 }
  0xf2   : > { %v640_v25 = vadd.f32 %v632_v21, %v1735_v42  ;;  %v370_v19 = vpop.permute.xlu2 %369  ;;  %vm2208_vm7 = vcmp.eq.f32.partialorder %v2662_v3, 8.507059e+37  ;;  %v875_v45 = vadd.f32 %v2079_v2, %v874_v6  ;;  %vm877_vm0 = vweird.f32 %v2079_v2  ;;  %vm2247_vm5 = vmor %vm683_vm6, %vm684_vm10 }
  0xf3   : > { %v378_v42 = vadd.f32 %v370_v19, %v1737_v43  ;;  %v1036_v3 = vsub.f32 1.0, %v1035_v4  ;;  %v843_v23 = vsub.f32 1.0, %v842_v63  ;;  %v2667_v43 = vand.u32 2147483648, %v1991_v57  ;;  %v2238_v50 = vpop.eup %1426 }
  0xf4   : > { %v722_v21 = vmul.f32 %v721_v58, %v640_v25  ;;  %v2236_v54 = vsel %vm1013_vm12, 1.0, %v1884_v22  ;;  %vm876_vm15 = vweird.f32 %v2017_v48  ;;  %v880_v13 = vand.u32 2147483647, %v2017_v48 }
  0xf5   : > { %v524_v7 = vmul.f32 %v523_v32, %v378_v42  ;;  %v2231_v59 = vor.u32 1.1754944e-38, %v2667_v43  ;;  %v695_v4 = vsub.f32 1.0, %v2052_v51  ;;  %vm2253_vm14 = vmor %vm876_vm15, %vm877_vm0  ;;  %v883_v19 = vor.u32 1.1754944e-38, %v882_v5 }
  0xf6   : > { %v726_v62 = vadd.f32 %v722_v21, %v1836_v37  ;;  %v686_v48 = vsel %vm2247_vm5, %v2054_v56, %v682_v53  ;;  %v488_v47 = vsel %vm2225_vm2, %v2061_v35, %v484_v36  ;;  %v879_v58 = vsel %vm2253_vm14, %v2079_v2, %v875_v45 }
  0xf7   : > { %v548_v63 = vadd.f32 %v1836_v37, %v524_v7  ;;  %v1037_v32 = vmul.f32 %v2139_v1, %v1036_v3  ;;  %1428 = vrcp.f32 %v2236_v54  ;;  %v844_v5 = vmul.f32 %v2156_v12, %v843_v23 }
  0xf8   : > { %v2270_v7 = vsel %vm658_vm4, 0.0, %v726_v62  ;;  %v887_v56 = vmul.f32 %v2238_v50, %v2154_v31  ;;  %vm834_vm2 = vcmp.eq.f32.partialorder %v1892_v11, 0.0  ;;  %vm881_vm6 = vcmp.eq.f32.partialorder %v880_v13, 8.507059e+37 }
  0xf9   : > { %v808_v42 = vpop.permute.xlu1 %807  ;;  %v2278_v35 = vsel %vm460_vm3, 0.0, %v548_v63  ;;  %v691_v53 = vsel %vm2190_vm13, %v2070_v10, %v686_v48  ;;  %v666_v21 = vmul.f32 %v2068_v9, %v665_v41  ;;  %v884_v45 = vsel %vm881_vm6, %v883_v19, %v879_v58 }
  0xfa   : > { %v817_v2 = vadd.f32 %v808_v42, %v1740_v46  ;;  %v628_v36 = vpop.permute.xlu2 %627  ;;  %v1045_v28 = vand.u32 2147483648, %v2075_v0  ;;  %v493_v23 = vsel %vm2208_vm7, %v492_v8, %v488_v47  ;;  %v1038_v62 = vadd.f32 %v2139_v1, %v1037_v32 }
  0xfb   : > { %v638_v3 = vadd.f32 %v628_v36, %v1714_v26  ;;  %vm1040_vm10 = vweird.f32 %v2139_v1  ;;  %vm669_vm11 = vweird.f32 %v2068_v9  ;;  %v2295_v46 = vsel %vm834_vm2, 1.0, %v1892_v11 }
  0xfc   : > { %v885_v43 = vmul.f32 %v884_v45, %v817_v2  ;;  %v845_v26 = vadd.f32 %v2156_v12, %v844_v5  ;;  %vm847_vm13 = vweird.f32 %v2156_v12  ;;  %v888_v44 = vsub.f32 1.0, %v887_v56 }
  0xfd   : > { %v692_v10 = vmul.f32 %v691_v53, %v638_v3  ;;  %v2299_v41 = vpop.eup %1428  ;;  %vm1039_vm7 = vweird.f32 %v2075_v0  ;;  %v1043_v16 = vand.u32 2147483647, %v2075_v0  ;;  %v852_v13 = vand.u32 2147483648, %v2088_v39 }
  0xfe   : > { %v903_v8 = vadd.f32 %v885_v43, %v2141_v49  ;;  %vm668_vm0 = vweird.f32 %v1991_v57  ;;  %vm2307_vm15 = vmor %vm1039_vm7, %vm1040_vm10  ;;  %vm846_vm5 = vweird.f32 %v2088_v39  ;;  %v850_v25 = vand.u32 2147483647, %v2088_v39 }
  0xff   : > { %v724_v6 = vadd.f32 %v692_v10, %v2056_v52  ;;  %1430 = vrcp.f32 %v2295_v46  ;;  %v1042_v0 = vsel %vm2307_vm15, %v2139_v1, %v1038_v62  ;;  %v1046_v19 = vor.u32 1.1754944e-38, %v1045_v28  ;;  %vm2319_vm14 = vmor %vm846_vm5, %vm847_vm13 }
 0x100   : > { %vm1011_vm6 = vcmp.eq.f32.partialorder %v1879_v20, 0.0  ;;  %v2326_v47 = vsel %vm835_vm9, 0.0, %v903_v8  ;;  %v849_v32 = vsel %vm2319_vm14, %v2156_v12, %v845_v26  ;;  %v889_v1 = vmul.f32 %v2238_v50, %v888_v44  ;;  %vm2361_vm14 = vmor %vm668_vm0, %vm669_vm11 }
 0x101   : > { %v984_v39 = vpop.permute.xlu1 %983  ;;  %v366_v58 = vpop.permute.xlu0 %365  ;;  %v1050_v42 = vmul.f32 %v2299_v41, %v2236_v54  ;;  %vm2676_vm10 = vcmp.eq.f32.partialorder %v1808_v15, 0.0  ;;  %vm1044_vm13 = vcmp.eq.f32.partialorder %v1043_v16, 8.507059e+37  ;;  %v853_v53 = vor.u32 1.1754944e-38, %v852_v13 }
 0x102   : > { %v2336_v5 = vsel %vm2676_vm10, 0.0, %v724_v6  ;;  %v994_v56 = vadd.f32 %v984_v39, %v1717_v27  ;;  %v376_v2 = vadd.f32 %v366_v58, %v1722_v29  ;;  %v804_v36 = vpop.permute.xlu2 %803  ;;  %v1047_v45 = vsel %vm1044_vm13, %v1046_v19, %v1042_v0  ;;  %v2684_v39 = vld [vmem:[#allocation14_spill] sm:$0xff]  ;;  %v2685_v58 = vld [vmem:[#allocation17_spill] sm:$0xff] }
 0x103   : > { %vm851_vm7 = vcmp.eq.f32.partialorder %v850_v25, 8.507059e+37  ;;  %v815_v12 = vadd.f32 %v804_v36, %v1725_v30  ;;  %v2344_v3 = vsel %vm1011_vm6, 1.0, %v1879_v20  ;;  %v667_v10 = vadd.f32 %v2068_v9, %v666_v21  ;;  %v2694_v25 = vld [vmem:[#allocation16_spill] sm:$0xff] }
 0x104   : > { %v1048_v28 = vmul.f32 %v1047_v45, %v994_v56  ;;  %v494_v43 = vmul.f32 %v493_v23, %v376_v2  ;;  %v854_v62 = vsel %vm851_vm7, %v853_v53, %v849_v32  ;;  %v890_v29 = vadd.f32 %v2238_v50, %v889_v1 }
 0x105   : > { %v2347_v26 = vpop.eup %1430  ;;  %v855_v27 = vmul.f32 %v854_v62, %v815_v12  ;;  %vm892_vm15 = vweird.f32 %v2238_v50  ;;  %v1051_v44 = vsub.f32 1.0, %v1050_v42  ;;  %v897_v16 = vand.u32 2147483648, %v2154_v31  ;;  %v2688_v42 = vld [vmem:[#allocation5_spill] sm:$0xff] }
 0x106   : > { %v1080_v30 = vadd.f32 %v1048_v28, %v2056_v52  ;;  %v546_v8 = vadd.f32 %v2056_v52, %v494_v43  ;;  %vm698_vm5 = vweird.f32 %v1946_v61  ;;  %1432 = vrcp.f32 %v2344_v3 }
 0x107   : > { %v901_v21 = vadd.f32 %v855_v27, %v1821_v24  ;;  %vm891_vm10 = vweird.f32 %v2154_v31  ;;  %v895_v13 = vand.u32 2147483647, %v2154_v31  ;;  %v696_v6 = vmul.f32 %v2022_v40, %v695_v4  ;;  %v2682_v31 = vld [vmem:[#allocation13_spill] sm:$0xff] }
 0x108   : > { %v671_v63 = vsel %vm2361_vm14, %v2068_v9, %v667_v10  ;;  %vm2373_vm13 = vmor %vm891_vm10, %vm892_vm15  ;;  %v857_v0 = vmul.f32 %v2347_v26, %v2295_v46  ;;  %vm2681_vm11 = vcmp.eq.f32.partialorder %v1804_v14, 0.0  ;;  %vm2683_vm0 = vcmp.eq.f32.partialorder %v2682_v31, 0.0 }
 0x109   : > { %v2381_v19 = vsel %vm2681_vm11, 0.0, %v546_v8  ;;  %v2385_v51 = vsel %vm2683_vm0, 0.0, %v1080_v30  ;;  %v626_v4 = vpop.permute.xlu0 %625  ;;  %v894_v9 = vsel %vm2373_vm13, %v2238_v50, %v890_v29  ;;  %v1052_v48 = vmul.f32 %v2299_v41, %v1051_v44  ;;  %v2689_v50 = vld [vmem:[#allocation6_spill] sm:$0xff] }
 0x10a   : > { %vm1014_vm7 = vcmp.eq.f32.partialorder %v2684_v39, 0.0  ;;  %vm2686_vm15 = vcmp.eq.f32.partialorder %v2685_v58, 0.0  ;;  %v2687_v1 = vand.u32 2147483647, %v1991_v57  ;;  %v637_v56 = vadd.f32 %v626_v4, %v2688_v42  ;;  %v810_v53 = vpop.permute.xlu2 %809 }
 0x10b   : > { %v2394_v32 = vsel %vm2686_vm15, 0.0, %v901_v21  ;;  %v898_v2 = vor.u32 1.1754944e-38, %v897_v16  ;;  %vm699_vm10 = vweird.f32 %v2022_v40  ;;  %vm896_vm13 = vcmp.eq.f32.partialorder %v895_v13, 8.507059e+37 }
 0x10c   : > { %vm673_vm14 = vcmp.eq.f32.partialorder %v2687_v1, 8.507059e+37  ;;  %v818_v45 = vadd.f32 %v810_v53, %v2689_v50  ;;  %v697_v12 = vadd.f32 %v2022_v40, %v696_v6  ;;  %v2403_v28 = vpop.eup %1432  ;;  %v858_v10 = vsub.f32 1.0, %v857_v0  ;;  %vm2422_vm15 = vmor %vm698_vm5, %vm699_vm10  ;;  %v2697_v53 = vld [vmem:[#allocation8_spill] sm:$0xff] }
 0x10d   : > { %v676_v36 = vsel %vm673_vm14, %v2231_v59, %v671_v63  ;;  %v899_v62 = vsel %vm896_vm13, %v898_v2, %v894_v9  ;;  %v2408_v57 = vsel %vm1014_vm7, 1.0, %v2684_v39  ;;  %v704_v29 = vand.u32 2147483648, %v1946_v61 }
 0x10e   : > { %v677_v43 = vmul.f32 %v676_v36, %v637_v56  ;;  %v900_v27 = vmul.f32 %v899_v62, %v818_v45  ;;  %v1053_v59 = vadd.f32 %v2299_v41, %v1052_v48  ;;  %vm1055_vm11 = vweird.f32 %v2299_v41 }
 0x10f   : > { %v702_v30 = vand.u32 2147483647, %v1946_v61  ;;  %vm1054_vm0 = vweird.f32 %v2236_v54  ;;  %v1060_v8 = vand.u32 2147483648, %v2236_v54  ;;  %v1058_v23 = vand.u32 2147483647, %v2236_v54 }
 0x110   : > { %v723_v44 = vadd.f32 %v677_v43, %v1821_v24  ;;  %v904_v16 = vadd.f32 %v900_v27, %v1836_v37  ;;  %v1020_v13 = vmul.f32 %v2403_v28, %v2344_v3  ;;  %1434 = vrcp.f32 %v2408_v57  ;;  %vm2433_vm14 = vmor %vm1054_vm0, %vm1055_vm11 }
 0x111   : > { %v701_v6 = vsel %vm2422_vm15, %v2022_v40, %v697_v12  ;;  %v859_v61 = vmul.f32 %v2347_v26, %v858_v10  ;;  %vm2695_vm5 = vcmp.eq.f32.partialorder %v2694_v25, 0.0  ;;  %v705_v54 = vor.u32 1.1754944e-38, %v704_v29  ;;  %v630_v4 = vpop.permute.xlu0 %629  ;;  %v2696_v40 = vld [vmem:[#allocation7_spill] sm:$0xff] }
 0x112   : > { %v2440_v0 = vsel %vm2695_vm5, 0.0, %v723_v44  ;;  %v1057_v9 = vsel %vm2433_vm14, %v2299_v41, %v1053_v59  ;;  %v2447_v48 = vsel %vm836_vm8, 0.0, %v904_v16  ;;  %vm703_vm10 = vcmp.eq.f32.partialorder %v702_v30, 8.507059e+37  ;;  %v986_v56 = vpop.permute.xlu2 %985 }
 0x113   : > { %v639_v1 = vadd.f32 %v630_v4, %v2696_v40  ;;  %v1061_v42 = vor.u32 1.1754944e-38, %v1060_v8  ;;  %v706_v2 = vsel %vm703_vm10, %v705_v54, %v701_v6  ;;  %vm1059_vm13 = vcmp.eq.f32.partialorder %v1058_v23, 8.507059e+37 }
 0x114   : > { %v995_v36 = vadd.f32 %v986_v56, %v2697_v53  ;;  %v1021_v50 = vsub.f32 1.0, %v1020_v13  ;;  %v860_v43 = vadd.f32 %v2347_v26, %v859_v61  ;;  %vm862_vm11 = vweird.f32 %v2347_v26 }
 0x115   : > { %v707_v45 = vmul.f32 %v706_v2, %v639_v1  ;;  %v1062_v12 = vsel %vm1059_vm13, %v1061_v42, %v1057_v9  ;;  %v867_v10 = vand.u32 2147483648, %v2295_v46  ;;  %vm861_vm0 = vweird.f32 %v2295_v46  ;;  %v2703_v1 = vld [vmem:[#allocation12_spill] sm:$0xff] }
 0x116   : > { %v2453_v41 = vpop.eup %1434  ;;  %v1063_v62 = vmul.f32 %v1062_v12, %v995_v36  ;;  %v865_v29 = vand.u32 2147483647, %v2295_v46  ;;  %v555_v30 = vmax.f32 %v2186_v18, 0.0  ;;  %vm2462_vm15 = vmor %vm861_vm0, %vm862_vm11  ;;  %v1022_v16 = vmul.f32 %v2403_v28, %v1021_v50  ;;  %v2700_v46 = vld [vmem:[#allocation15_spill] sm:$0xff] }
 0x117   : > { %v725_v27 = vadd.f32 %v707_v45, %v2141_v49  ;;  %v566_v44 = vpop.permute.xlu1 %565  ;;  %v864_v23 = vsel %vm2462_vm15, %v2347_v26, %v860_v43  ;;  %vm2701_vm14 = vcmp.eq.f32.partialorder %v2700_v46, 0.0  ;;  %v868_v6 = vor.u32 1.1754944e-38, %v867_v10 }
 0x118   : > { %v1081_v59 = vadd.f32 %v1063_v62, %v2141_v49  ;;  %v575_v21 = vsel %vm459_vm1, 0.0, %v566_v44  ;;  %v1065_v49 = vmul.f32 %v2453_v41, %v2408_v57  ;;  %vm585_vm1 = vcmask 130048   ;;  %vm2705_vm15 = vmmov %vm2701_vm14 }
 0x119   : > { %v729_v13 = vsel %vm2701_vm14, 0.0, %v725_v27  ;;  %v579_v18 = vadd.f32 %v575_v21, %v555_v30  ;;  %v806_v63 = vpop.permute.xlu0 %805  ;;  %vm866_vm5 = vcmp.eq.f32.partialorder %v865_v29, 8.507059e+37  ;;  %v553_v4 = vmax.f32 %v2201_v17, 0.0  ;;  %v2706_v30 = vld [vmem:[#allocation10_spill] sm:$0xff] }
 0x11a   : > { %v2478_v61 = vsel %vm1013_vm12, 0.0, %v1081_v59  ;;  %v816_v26 = vadd.f32 %v806_v63, %v2702_v55  ;;  %v562_v54 = vpop.permute.xlu2 %561  ;;  %v869_v40 = vsel %vm866_vm5, %v868_v6, %v864_v23  ;;  %vm2704_vm10 = vcmp.eq.f32.partialorder %v2703_v1, 0.0 }
 0x11b   : > { %v583_v9 = vmax.f32 %v579_v18, 0.0  ;;  %v573_v42 = vsel %vm2704_vm10, 0.0, %v562_v54  ;;  %vm1025_vm13 = vweird.f32 %v2403_v28  ;;  %v1023_v53 = vadd.f32 %v2403_v28, %v1022_v16 }
 0x11c   : > { %v870_v56 = vmul.f32 %v869_v40, %v816_v26  ;;  %v577_v2 = vadd.f32 %v573_v42, %v553_v4  ;;  %v1066_v36 = vsub.f32 1.0, %v1065_v49  ;;  %v1030_v50 = vand.u32 2147483648, %v2344_v3 }
 0x11d   : > { %588 = vst.msk [vmem:[%s2483_s9 + $0x10] sm:$0xff] %vm585_vm1, %v583_v9  ;;  %vm1024_vm11 = vweird.f32 %v2344_v3  ;;  %v1028_v12 = vand.u32 2147483647, %v2344_v3  ;;  %v733_v62 = vmax.f32 %v729_v13, 0.0  ;;  %v556_v21 = vmax.f32 %v2278_v35, 0.0 }
 0x11e   : > { %v902_v45 = vadd.f32 %v870_v56, %v2056_v52  ;;  %v581_v17 = vmax.f32 %v577_v2, 0.0  ;;  %vm1026_vm0 = vmor %vm1024_vm11, %vm1025_vm13  ;;  %v1067_v29 = vmul.f32 %v2453_v41, %v1066_v36  ;;  %v1031_v44 = vor.u32 1.1754944e-38, %v1030_v50 }
 0x11f   : > { %v744_v43 = vpop.permute.xlu1 %743  ;;  %v1027_v27 = vsel %vm1026_vm0, %v2403_v28, %v1023_v53  ;;  %vm1029_vm14 = vcmp.eq.f32.partialorder %v1028_v12, 8.507059e+37  ;;  %vm1070_vm5 = vweird.f32 %v2453_v41  ;;  %v1075_v6 = vand.u32 2147483648, %v2408_v57 }
 0x120   : > { %586 = vst.msk [vmem:[%s2483_s9] sm:$0xff] %vm585_vm1, %v581_v17  ;;  %v753_v10 = vsel %vm2705_vm15, 0.0, %v744_v43  ;;  %v2505_v52 = vsel %vm834_vm2, 0.0, %v902_v45  ;;  %v1032_v46 = vsel %vm1029_vm14, %v1031_v44, %v1027_v27  ;;  %v1068_v18 = vadd.f32 %v2453_v41, %v1067_v29 }
 0x121   : > { %v757_v59 = vadd.f32 %v753_v10, %v733_v62  ;;  %v982_v3 = vpop.permute.xlu0 %981  ;;  %vm1069_vm10 = vweird.f32 %v2408_v57  ;;  %v1073_v35 = vand.u32 2147483647, %v2408_v57  ;;  %v734_v33 = vmax.f32 %v2270_v7, 0.0  ;;  %v2707_v7 = vld [vmem:[#allocation11_spill] sm:$0xff] }
 0x122   : > { %v993_v8 = vadd.f32 %v982_v3, %v2706_v30  ;;  %v568_v16 = vpop.permute.xlu2 %567  ;;  %v1076_v40 = vor.u32 1.1754944e-38, %v1075_v6  ;;  %v731_v42 = vmax.f32 %v2440_v0, 0.0  ;;  %v911_v17 = vmax.f32 %v2326_v47, 0.0 }
 0x123   : > { %v761_v23 = vmax.f32 %v757_v59, 0.0  ;;  %v576_v28 = vsel %vm460_vm3, 0.0, %v568_v16  ;;  %vm1071_vm3 = vmor %vm1069_vm10, %vm1070_vm5  ;;  %vm1074_vm13 = vcmp.eq.f32.partialorder %v1073_v35, 8.507059e+37  ;;  %v554_v10 = vmax.f32 %v2381_v19, 0.0 }
 0x124   : > { %v1033_v13 = vmul.f32 %v1032_v46, %v993_v8  ;;  %v580_v49 = vadd.f32 %v576_v28, %v556_v21  ;;  %v1072_v4 = vsel %vm1071_vm3, %v2453_v41, %v1068_v18  ;;  %vm2709_vm11 = vcmp.eq.f32.partialorder %v1804_v14, 0.0 }
 0x125   : > { %1267 = vst.msk [vmem:[%s2483_s9 + $0x30] sm:$0xff] %vm585_vm1, %v761_v23  ;;  %v1077_v38 = vsel %vm1074_vm13, %v1076_v40, %v1072_v4  ;;  %v909_v47 = vmax.f32 %v2394_v32, 0.0  ;;  %vm2710_vm0 = vcmp.eq.f32.partialorder %v2685_v58, 0.0  ;;  %v1088_v19 = vmax.f32 %v2385_v51, 0.0 }
 0x126   : > { %v1079_v63 = vadd.f32 %v1033_v13, %v1821_v24  ;;  %v584_v55 = vmax.f32 %v580_v49, 0.0  ;;  %v732_v16 = vmax.f32 %v2336_v5, 0.0  ;;  %vm2712_vm15 = vcmp.eq.f32.partialorder %v1808_v15, 0.0 }
 0x127   : > { %v746_v26 = vpop.permute.xlu1 %745  ;;  %v912_v23 = vmax.f32 %v2447_v48, 0.0  ;;  %v910_v15 = vmax.f32 %v2505_v52, 0.0  ;;  %v1089_v18 = vmax.f32 %v2478_v61, 0.0 }
 0x128   : > { %589 = vst.msk [vmem:[%s2483_s9 + $0x18] sm:$0xff] %vm585_vm1, %v584_v55  ;;  %v754_v54 = vsel %vm658_vm4, 0.0, %v746_v26  ;;  %v2527_v24 = vsel %vm1011_vm6, 0.0, %v1079_v63  ;;  %vm2708_vm4 = vcmp.eq.f32.partialorder %v2694_v25, 0.0 }
 0x129   : > { %v758_v9 = vadd.f32 %v754_v54, %v734_v33  ;;  %v988_v57 = vpop.permute.xlu0 %987  ;;  %v1087_v11 = vmax.f32 %v2527_v24, 0.0 }
 0x12a   : > { %v996_v1 = vadd.f32 %v988_v57, %v2707_v7  ;;  %v740_v56 = vpop.permute.xlu2 %739 }
 0x12b   : > { %v762_v2 = vmax.f32 %v758_v9, 0.0  ;;  %v751_v53 = vsel %vm2708_vm4, 0.0, %v740_v56 }
 0x12c   : > { %v1078_v41 = vmul.f32 %v1077_v38, %v996_v1  ;;  %v755_v36 = vadd.f32 %v751_v53, %v731_v42 }
 0x12d   : > { %1268 = vst.msk [vmem:[%s2483_s9 + $0x38] sm:$0xff] %vm585_vm1, %v762_v2 }
 0x12e   : > { %v1082_v50 = vadd.f32 %v1078_v41, %v1836_v37  ;;  %v759_v45 = vmax.f32 %v755_v36, 0.0 }
 0x12f   : > { %v922_v12 = vpop.permute.xlu1 %921 }
 0x130   : > { %1265 = vst.msk [vmem:[%s2483_s9 + $0x20] sm:$0xff] %vm585_vm1, %v759_v45  ;;  %v931_v0 = vsel %vm835_vm9, 0.0, %v922_v12  ;;  %v1086_v25 = vsel %vm1014_vm7, 0.0, %v1082_v50  ;;  %vm2711_vm9 = vcmp.eq.f32.partialorder %v2682_v31, 0.0 }
 0x131   : > { %v935_v43 = vadd.f32 %v931_v0, %v911_v17  ;;  %v564_v62 = vpop.permute.xlu0 %563  ;;  %v1090_v4 = vmax.f32 %v1086_v25, 0.0 }
 0x132   : > { %v574_v37 = vsel %vm2709_vm11, 0.0, %v564_v62  ;;  %v918_v27 = vpop.permute.xlu2 %917 }
 0x133   : > { %v939_v29 = vmax.f32 %v935_v43, 0.0  ;;  %v578_v59 = vadd.f32 %v574_v37, %v554_v10  ;;  %v929_v60 = vsel %vm2710_vm0, 0.0, %v918_v27 }
 0x134   : > { %v933_v44 = vadd.f32 %v929_v60, %v909_v47 }
 0x135   : > { %1274 = vst.msk [vmem:[%s2483_s9 + $0x50] sm:$0xff] %vm585_vm1, %v939_v29  ;;  %v582_v3 = vmax.f32 %v578_v59, 0.0 }
 0x136   : > { %v937_v30 = vmax.f32 %v933_v44, 0.0 }
 0x137   : > { %587 = vst.msk [vmem:[%s2483_s9 + $0x8] sm:$0xff] %vm585_vm1, %v582_v3  ;;  %v1098_v14 = vpop.permute.xlu1 %1097 }
 0x138   : > { %1272 = vst.msk [vmem:[%s2483_s9 + $0x40] sm:$0xff] %vm585_vm1, %v937_v30  ;;  %v1108_v32 = vsel %vm2711_vm9, 0.0, %v1098_v14 }
 0x139   : > { %v1112_v8 = vadd.f32 %v1108_v32, %v1088_v19  ;;  %v742_v58 = vpop.permute.xlu0 %741 }
 0x13a   : > { %v752_v21 = vsel %vm2712_vm15, 0.0, %v742_v58  ;;  %v924_v46 = vpop.permute.xlu2 %923 }
 0x13b   : > { %v756_v28 = vadd.f32 %v752_v21, %v732_v16  ;;  %v932_v51 = vsel %vm836_vm8, 0.0, %v924_v46  ;;  %v1116_v33 = vmax.f32 %v1112_v8, 0.0 }
 0x13c   : > { %v936_v13 = vadd.f32 %v932_v51, %v912_v23 }
 0x13d   : > { %v760_v49 = vmax.f32 %v756_v28, 0.0  ;;  %1280 = vst.msk [vmem:[%s2483_s9 + $0x68] sm:$0xff] %vm585_vm1, %v1116_v33 }
 0x13e   : > { %v940_v31 = vmax.f32 %v936_v13, 0.0 }
 0x13f   : > { %1266 = vst.msk [vmem:[%s2483_s9 + $0x28] sm:$0xff] %vm585_vm1, %v760_v49 }
 0x140   : > { %1275 = vst.msk [vmem:[%s2483_s9 + $0x58] sm:$0xff] %vm585_vm1, %v940_v31 }
 0x141   : > { %v920_v5 = vpop.permute.xlu0 %919 }
 0x142   : > { %v930_v48 = vsel %vm834_vm2, 0.0, %v920_v5  ;;  %v1100_v34 = vpop.permute.xlu2 %1099 }
 0x143   : > { %v934_v6 = vadd.f32 %v930_v48, %v910_v15  ;;  %v1109_v63 = vsel %vm1013_vm12, 0.0, %v1100_v34 }
 0x144   : > { %v1113_v55 = vadd.f32 %v1109_v63, %v1089_v18 }
 0x145   : > { %v938_v35 = vmax.f32 %v934_v6, 0.0 }
 0x146   : > { %v1117_v26 = vmax.f32 %v1113_v55, 0.0 }
 0x147   : > { %1273 = vst.msk [vmem:[%s2483_s9 + $0x48] sm:$0xff] %vm585_vm1, %v938_v35 }
 0x148   : > { %1281 = vst.msk [vmem:[%s2483_s9 + $0x70] sm:$0xff] %vm585_vm1, %v1117_v26 }
 0x149   : > { %v1096_v61 = vpop.permute.xlu0 %1095 }
 0x14a   : > { %v1107_v52 = vsel %vm1011_vm6, 0.0, %v1096_v61 }
 0x14b   : > { %v1111_v54 = vadd.f32 %v1107_v52, %v1087_v11 }
 0x14d   : > { %v1115_v22 = vmax.f32 %v1111_v54, 0.0 }
 0x14f   : > { %1279 = vst.msk [vmem:[%s2483_s9 + $0x60] sm:$0xff] %vm585_vm1, %v1115_v22 }
 0x151   : > { %v1102_v9 = vpop.permute.xlu0 %1101 }
 0x152   : > { %v1110_v40 = vsel %vm1014_vm7, 0.0, %v1102_v9 }
 0x153   : > { %v1114_v57 = vadd.f32 %v1110_v40, %v1090_v4 }
 0x155   : > { %v1118_v7 = vmax.f32 %v1114_v57, 0.0 }
 0x157   : > { %1282 = vst.msk [vmem:[%s2483_s9 + $0x78] sm:$0xff] %vm585_vm1, %v1118_v7 }
 0x158 PF: > { %p1324_p4 = scmp.ge.s32.totalorder %s1498_s21, 2  ;;  %s1174_s10 = sand.u32 1, %s1486_s18  }
 0x159   : > { %s1175_s12 = scalar_lea.sflag [#allocation3], %s1174_s10 }
 0x15a   : > { %p1321_p5 = pnand %p1324_p4, %p1573_p6 }
 0x15c   : > { %p1322_p7 = pneg %p1321_p5 }
 0x15e   : > { %1481 = dma.done.wait (%p1322_p7), %s1175_s12, 64  }
 0x15f   : > { %1483 = vsyncadd (%p1322_p7), %s1175_s12, 4294967232  ;;  %p16_p8 = scmp.ge.s32.totalorder %s1557_s24, 4   ;;  %s2713_s18 = smov %s1490_s19 }
 0x160   : > { %s2714_s19 = smov %s1494_s20  ;;  %s2715_s20 = smov %s1567_s27 }
 0x161   : > { %s2716_s21 = smov %s1557_s24  ;;  %18 = sbr.rel (!%p16_p8) target bundleno = 3 (0x3), region = 100 }
 0x166   :  { %1181 = vsyncpa [#allocation3], 1 }
 0x167   :  { %1183 = vsyncpa [#allocation3 + $0x1], 1 }

</bundles_post_ra>
